<compile_context>
chip_gen: v7x
topology: tpu7x:2x2x1
jax: 0.10.0
libtpu: 0.0.40
codegen_flags: <defaults>
</compile_context>

<pallas_src>
import numpy as np
import jax
import jax.numpy as jnp
from jax import lax
from jax.experimental import pallas as pl
from jax.experimental.pallas import tpu as pltpu

LRELU_SLOPE = 0.3
BN_EPS = 1e-5
KSIZE = 4  # all convs are 4x4


# ----------------------------- Pallas kernel --------------------------------

def _lrelu(y):
    # slope < 1  =>  max(y, slope*y) == LeakyReLU(y)
    return jnp.maximum(y, LRELU_SLOPE * y)


def _batchnorm(y, gamma, beta):
    # training-mode BatchNorm2d: per-channel (column) stats over all rows
    # (rows = (n, i, j) == the N*H*W reduction PyTorch does), biased variance.
    mean = jnp.mean(y, axis=0, keepdims=True)
    msq = jnp.mean(y * y, axis=0, keepdims=True)          # two-moment form
    var = jnp.maximum(msq - mean * mean, 0.0)
    scale = gamma * lax.rsqrt(var + BN_EPS)
    return y * scale + (beta - mean * scale)


def _disc_fused_kernel(p1_ref, w1_ref, t8_ref, s2_ref, mg_ref, sg_ref, w2_ref,
                       t16_ref, m3_ref, s3_ref, w3_ref, wl_ref, gb_ref, o_ref):
    f32, bf16 = jnp.float32, jnp.bfloat16
    c1 = w1_ref.shape[1]          # 8   (ndf)
    c2 = w2_ref.shape[1]          # 16  (2*ndf)

    # packed affine params: [g1 | b1 | g2 | b2 | linear bias | zero pad], one f32 row
    gb = gb_ref[...]                                               # [1, 128]
    g1 = gb[:, 0:c1]
    b1 = gb[:, c1:2 * c1]
    g2 = gb[:, 2 * c1:2 * c1 + c2]
    b2 = gb[:, 2 * c1 + c2:2 * c1 + 2 * c2]
    bl = gb[:, 2 * c1 + 2 * c2:2 * c1 + 2 * c2 + 1]

    # -- layer 1: Conv(3->8, k4 s2 p1) as one dot on pre-built patches + BN + LeakyReLU
    y1 = jnp.dot(p1_ref[...], w1_ref[...], preferred_element_type=f32)      # [128, 8]
    h1 = _lrelu(_batchnorm(y1, g1, b1)).astype(bf16)

    # -- layer 2: Conv(8->16, k4 s2 p1) + BN + LeakyReLU.
    #    Lane-tile h1 across the 16 taps, gather all (out_pos, tap) rows with one
    #    stacked 0/1 matmul, mask + block-sum to the [32, 128] patch slab (exact
    #    gather, zero rows where the tap hits padding), then one full-K conv dot.
    h1t = jnp.dot(h1, t8_ref[...], preferred_element_type=f32)              # [128, 128]
    gt = jnp.dot(s2_ref[...], h1t.astype(bf16), preferred_element_type=f32)  # [512, 128]
    p2 = jnp.dot(sg_ref[...], (mg_ref[...] * gt).astype(bf16),
                 preferred_element_type=f32)                                 # [32, 128]
    y2 = jnp.dot(p2.astype(bf16), w2_ref[...], preferred_element_type=f32)   # [32, 16]
    h2 = _lrelu(_batchnorm(y2, g2, b2)).astype(bf16)

    # -- layer 3: Conv(16->256, k4 s1 p0) + LeakyReLU (+ implicit Flatten).
    #    Non-overlapping windows: lane-tile + mask + block-sum builds the [2, 256]
    #    patch slab directly, then one K=256 conv dot.
    h2t = jnp.dot(h2, t16_ref[...], preferred_element_type=f32)             # [32, 256]
    p3 = jnp.dot(s3_ref[...], (m3_ref[...] * h2t).astype(bf16),
                 preferred_element_type=f32)                                 # [2, 256]
    y3 = jnp.dot(p3.astype(bf16), w3_ref[...], preferred_element_type=f32)   # [2, 256]
    h3 = _lrelu(y3).astype(bf16)

    # -- Linear(256->1) + numerically-stable sigmoid --
    logits = jnp.dot(h3, wl_ref[...], preferred_element_type=f32) + bl       # [2, 1]
    z = jnp.exp(-jnp.abs(logits))
    o_ref[...] = jnp.where(logits >= 0.0, 1.0 / (1.0 + z), z / (1.0 + z))


# --------------------- pack-time constant construction -----------------------

def _tile_mat(c, taps):
    """[c, taps*c]: T[cc, t*c+cc] = 1  (lane-tiles a c-wide slab taps times)."""
    t = np.zeros((c, taps * c), np.float32)
    for k in range(taps):
        t[np.arange(c), k * c + np.arange(c)] = 1.0
    return t


def _tap_mask(rows, c, taps):
    """[rows, taps*c]: 1 on the tap block matching (row % taps), else 0."""
    m = np.zeros((rows, taps * c), np.float32)
    for r in range(rows):
        k = r % taps
        m[r, k * c:(k + 1) * c] = 1.0
    return m


def _block_sum(n_out, block):
    """[n_out, n_out*block]: 1 iff column // block == row (sums contiguous row blocks)."""
    s = np.zeros((n_out, n_out * block), np.float32)
    for o in range(n_out):
        s[o, o * block:(o + 1) * block] = 1.0
    return s


def _stacked_selection(batch, h_in, k, stride, pad):
    """Stacked 0/1 gather matrix for a k x k / stride / pad conv.
    Row (o*k*k + kh*k + kw) is one-hot at the flattened input row read by tap
    (kh, kw) of output position o, or all-zero where the tap hits zero padding.
    Row/col flattening is (n, i, j) channel-last."""
    h_out = (h_in + 2 * pad - k) // stride + 1
    s = np.zeros((batch * h_out * h_out * k * k, batch * h_in * h_in), np.float32)
    for b in range(batch):
        for oi in range(h_out):
            for oj in range(h_out):
                o = (b * h_out + oi) * h_out + oj
                for kh in range(k):
                    for kw in range(k):
                        i = stride * oi - pad + kh
                        j = stride * oj - pad + kw
                        if 0 <= i < h_in and 0 <= j < h_in:
                            s[o * k * k + kh * k + kw,
                              (b * h_in + i) * h_in + j] = 1.0
    return s


def pack_params(params, *, batch, img_channels, image_size):
    """One-time transformation of the PyTorch-layout weights into the kernel layout
    (valid for image_size=16: two strided conv blocks + the final 4x4 conv)."""
    bf16 = jnp.bfloat16
    ndf = params["w1"].shape[0]               # 8
    c2 = 2 * ndf                              # 16
    taps = KSIZE * KSIZE                      # 16
    h1 = image_size // 2                      # 8  (layer-1 output spatial size)
    h2 = h1 // 2                              # 4  (layer-2 output spatial size)
    n2 = batch * h2 * h2                      # 32 (layer-2 output rows)
    k1 = taps * img_channels                  # 48

    # conv weights reordered to rows=(kh, kw, c_in), cols=c_out (matches patch slabs)
    w1m = jnp.transpose(params["w1"], (2, 3, 1, 0)).reshape(k1, ndf)
    w1m = jnp.pad(w1m, ((0, 128 - k1), (0, 0))).astype(bf16)                  # [128, 8]
    w2m = jnp.transpose(params["w2"], (2, 3, 1, 0)).reshape(taps * ndf, c2).astype(bf16)   # [128, 16]
    w3m = jnp.transpose(params["w3"], (2, 3, 1, 0)).reshape(taps * c2, 256).astype(bf16)   # [256, 256]
    wlm = params["wl"].T.astype(bf16)                                          # [256, 1]

    # layer-2 gather/relayout constants
    s2 = jnp.asarray(_stacked_selection(batch, h1, KSIZE, 2, 1), bf16)         # [512, 128]
    t8 = jnp.asarray(_tile_mat(ndf, taps), bf16)                               # [8, 128]
    mg = jnp.asarray(_tap_mask(n2 * taps, ndf, taps), jnp.float32)             # [512, 128]
    sg = jnp.asarray(_block_sum(n2, taps), bf16)                               # [32, 512]

    # layer-3 relayout constants (windows don't overlap; row % 16 == tap index)
    t16 = jnp.asarray(_tile_mat(c2, taps), bf16)                               # [16, 256]
    m3 = jnp.asarray(_tap_mask(n2, c2, taps), jnp.float32)                     # [32, 256]
    s3 = jnp.asarray(_block_sum(batch, h2 * h2), bf16)                         # [2, 32]

    # packed per-channel affine params + linear bias in one lane-padded f32 row
    gb = jnp.concatenate([params["g1"], params["b1"], params["g2"], params["b2"],
                          params["bl"]]).astype(jnp.float32)
    gb = jnp.pad(gb, (0, 128 - gb.shape[0])).reshape(1, 128)

    return dict(w1=w1m, w2=w2m, w3=w3m, wl=wlm, gb=gb,
                s2=s2, t8=t8, mg=mg, sg=sg, t16=t16, m3=m3, s3=s3)


# ------------------------------ JAX glue -------------------------------------

def _full_spec(shape):
    # single-invocation, full-array block
    return pl.BlockSpec(shape, lambda i: (0,) * len(shape))


def discriminator_forward(x, packed):
    """x: [N, C, H, W] f32 (NCHW like the PyTorch module). Returns [N, 1] sigmoid probs."""
    n, c, h, w = x.shape
    ho = h // 2

    # layer-1 im2col (channel-last, (kh, kw, c) ordering), K zero-padded to 128 lanes.
    # Kept in the wrapper: one tiny XLA fusion producing a 32 KB lane-dense slab.
    xp = jnp.pad(jnp.transpose(x, (0, 2, 3, 1)), ((0, 0), (1, 1), (1, 1), (0, 0)))
    cols = [xp[:, kh:kh + 2 * ho:2, kw:kw + 2 * ho:2, :]
            for kh in range(KSIZE) for kw in range(KSIZE)]
    p1 = jnp.concatenate(cols, axis=-1).reshape(n * ho * ho, KSIZE * KSIZE * c)
    p1 = jnp.pad(p1, ((0, 0), (0, 128 - p1.shape[1]))).astype(jnp.bfloat16)    # [128, 128]

    operands = (p1, packed["w1"], packed["t8"], packed["s2"], packed["mg"],
                packed["sg"], packed["w2"], packed["t16"], packed["m3"],
                packed["s3"], packed["w3"], packed["wl"], packed["gb"])
    return pl.pallas_call(
        _disc_fused_kernel,
        grid=(1,),
        in_specs=[_full_spec(op.shape) for op in operands],
        out_specs=_full_spec((n, 1)),
        out_shape=jax.ShapeDtypeStruct((n, 1), jnp.float32),
        compiler_params=pltpu.CompilerParams(dimension_semantics=("arbitrary",)),
    )(*operands)


# -------------------------- pure-XLA reference -------------------------------

def _reference_forward(x, params):
    def conv(xx, ww, stride, pad):
        return lax.conv_general_dilated(
            xx, ww, window_strides=(stride, stride), padding=[(pad, pad), (pad, pad)],
            dimension_numbers=("NCHW", "OIHW", "NCHW"))

    def bn(y, g, b):
        mean = jnp.mean(y, axis=(0, 2, 3), keepdims=True)
        var = jnp.mean(jnp.square(y - mean), axis=(0, 2, 3), keepdims=True)
        return (y - mean) / jnp.sqrt(var + BN_EPS) * g.reshape(1, -1, 1, 1) \
            + b.reshape(1, -1, 1, 1)

    lrelu = lambda y: jnp.where(y >= 0.0, y, LRELU_SLOPE * y)

    h = lrelu(bn(conv(x, params["w1"], 2, 1), params["g1"], params["b1"]))
    h = lrelu(bn(conv(h, params["w2"], 2, 1), params["g2"], params["b2"]))
    h = lrelu(conv(h, params["w3"], 1, 0)).reshape(x.shape[0], -1)
    return jax.nn.sigmoid(h @ params["wl"].T + params["bl"])


# --------------------------------- main ---------------------------------------

if __name__ == "__main__":
    key = jax.random.PRNGKey(0)
    batch, img_channels, image_size, ndf = 2, 3, 16, 8
    k0, k1, k2, k3, k4 = jax.random.split(key, 5)

    x = jax.random.normal(k0, (batch, img_channels, image_size, image_size), jnp.float32)

    params = dict(
        # Conv2d(3->8, k4) ; BatchNorm2d(8) default affine init (gamma=1, beta=0)
        w1=jax.random.normal(k1, (ndf, img_channels, 4, 4), jnp.float32) * 0.05,
        g1=jnp.ones((ndf,), jnp.float32), b1=jnp.zeros((ndf,), jnp.float32),
        # Conv2d(8->16, k4) ; BatchNorm2d(16)
        w2=jax.random.normal(k2, (ndf * 2, ndf, 4, 4), jnp.float32) * 0.05,
        g2=jnp.ones((ndf * 2,), jnp.float32), b2=jnp.zeros((ndf * 2,), jnp.float32),
        # Conv2d(16->256, k4, s1, p0)
        w3=jax.random.normal(k3, (256, ndf * 2, 4, 4), jnp.float32) * 0.05,
        # Linear(256 -> 1)
        wl=jax.random.normal(k4, (1, 256), jnp.float32) * 0.05,
        bl=jnp.zeros((1,), jnp.float32),
    )

    packed = pack_params(params, batch=batch, img_channels=img_channels,
                         image_size=image_size)
    fwd = jax.jit(discriminator_forward)
    out = jax.block_until_ready(fwd(x, packed))

    assert out.shape == (batch, 1), out.shape
    assert bool(jnp.all(jnp.isfinite(out)))
    assert bool(jnp.all((out >= 0.0) & (out <= 1.0)))          # sigmoid output range

    ref = _reference_forward(x, params)                        # pure-XLA reference
    assert bool(jnp.allclose(out, ref, atol=5e-2)), (out, ref)  # bf16-tolerant check

    print("KERNEL_OK")
</pallas_src>

<mosaic_0001>
module attributes {stable_mosaic.version = 11 : i64} {
  func.func @_disc_fused_kernel(%arg0: i32, %arg1: memref<128x128xbf16, #tpu.memory_space<vmem>>, %arg2: memref<128x8xbf16, #tpu.memory_space<vmem>>, %arg3: memref<8x128xbf16, #tpu.memory_space<vmem>>, %arg4: memref<512x128xbf16, #tpu.memory_space<vmem>>, %arg5: memref<512x128xf32, #tpu.memory_space<vmem>>, %arg6: memref<32x512xbf16, #tpu.memory_space<vmem>>, %arg7: memref<128x16xbf16, #tpu.memory_space<vmem>>, %arg8: memref<16x256xbf16, #tpu.memory_space<vmem>>, %arg9: memref<32x256xf32, #tpu.memory_space<vmem>>, %arg10: memref<2x32xbf16, #tpu.memory_space<vmem>>, %arg11: memref<256x256xbf16, #tpu.memory_space<vmem>>, %arg12: memref<256x1xbf16, #tpu.memory_space<vmem>>, %arg13: memref<1x128xf32, #tpu.memory_space<vmem>>, %arg14: memref<2x1xf32, #tpu.memory_space<vmem>>) attributes {dimension_semantics = [#tpu.dimension_semantics<arbitrary>], iteration_bounds = array<i64: 1>, scalar_prefetch = 0 : i64, scratch_operands = 0 : i64, tpu.core_type = #tpu.core_type<tc>, window_params = [{pipeline_mode = #tpu.pipeline_mode<synchronous>, transform_indices = @transform_0, window_bounds = array<i64: 128, 128>}, {pipeline_mode = #tpu.pipeline_mode<synchronous>, transform_indices = @transform_1, window_bounds = array<i64: 128, 8>}, {pipeline_mode = #tpu.pipeline_mode<synchronous>, transform_indices = @transform_2, window_bounds = array<i64: 8, 128>}, {pipeline_mode = #tpu.pipeline_mode<synchronous>, transform_indices = @transform_3, window_bounds = array<i64: 512, 128>}, {pipeline_mode = #tpu.pipeline_mode<synchronous>, transform_indices = @transform_4, window_bounds = array<i64: 512, 128>}, {pipeline_mode = #tpu.pipeline_mode<synchronous>, transform_indices = @transform_5, window_bounds = array<i64: 32, 512>}, {pipeline_mode = #tpu.pipeline_mode<synchronous>, transform_indices = @transform_6, window_bounds = array<i64: 128, 16>}, {pipeline_mode = #tpu.pipeline_mode<synchronous>, transform_indices = @transform_7, window_bounds = array<i64: 16, 256>}, {pipeline_mode = #tpu.pipeline_mode<synchronous>, transform_indices = @transform_8, window_bounds = array<i64: 32, 256>}, {pipeline_mode = #tpu.pipeline_mode<synchronous>, transform_indices = @transform_9, window_bounds = array<i64: 2, 32>}, {pipeline_mode = #tpu.pipeline_mode<synchronous>, transform_indices = @transform_10, window_bounds = array<i64: 256, 256>}, {pipeline_mode = #tpu.pipeline_mode<synchronous>, transform_indices = @transform_11, window_bounds = array<i64: 256, 1>}, {pipeline_mode = #tpu.pipeline_mode<synchronous>, transform_indices = @transform_12, window_bounds = array<i64: 1, 128>}, {pipeline_mode = #tpu.pipeline_mode<synchronous>, transform_indices = @transform_13, window_bounds = array<i64: 2, 1>}]} {
    %c0 = arith.constant 0 : index
    %c0_0 = arith.constant 0 : index
    %0 = vector.load %arg13[%c0, %c0_0] : memref<1x128xf32, #tpu.memory_space<vmem>>, vector<1x128xf32>
    %1 = vector.extract_strided_slice %0 {offsets = [0, 0], sizes = [1, 8], strides = [1, 1]} : vector<1x128xf32> to vector<1x8xf32>
    %2 = vector.extract_strided_slice %0 {offsets = [0, 8], sizes = [1, 8], strides = [1, 1]} : vector<1x128xf32> to vector<1x8xf32>
    %3 = vector.extract_strided_slice %0 {offsets = [0, 16], sizes = [1, 16], strides = [1, 1]} : vector<1x128xf32> to vector<1x16xf32>
    %4 = vector.extract_strided_slice %0 {offsets = [0, 32], sizes = [1, 16], strides = [1, 1]} : vector<1x128xf32> to vector<1x16xf32>
    %5 = vector.extract_strided_slice %0 {offsets = [0, 48], sizes = [1, 1], strides = [1, 1]} : vector<1x128xf32> to vector<1x1xf32>
    %c0_1 = arith.constant 0 : index
    %c0_2 = arith.constant 0 : index
    %6 = vector.load %arg1[%c0_1, %c0_2] : memref<128x128xbf16, #tpu.memory_space<vmem>>, vector<128x128xbf16>
    %c0_3 = arith.constant 0 : index
    %c0_4 = arith.constant 0 : index
    %7 = vector.load %arg2[%c0_3, %c0_4] : memref<128x8xbf16, #tpu.memory_space<vmem>>, vector<128x8xbf16>
    %cst = arith.constant dense<0.000000e+00> : vector<128x8xf32>
    %8 = tpu.matmul %6, %7, %cst {dimension_numbers = #tpu.dot_dimension_numbers<[1], [0], [0], [1], [0, 0, 1, 1], [], []>} : vector<128x128xbf16>, vector<128x8xbf16>, vector<128x8xf32> -> vector<128x8xf32>
    %cst_5 = arith.constant dense<0.000000e+00> : vector<8xf32>
    %9 = vector.multi_reduction <add>, %8, %cst_5 [0] : vector<128x8xf32> to vector<8xf32>
    %10 = vector.shape_cast %9 : vector<8xf32> to vector<1x8xf32>
    %cst_6 = arith.constant 1.280000e+02 : f32
    %11 = vector.broadcast %cst_6 : f32 to vector<1x8xf32>
    %12 = arith.divf %10, %11 : vector<1x8xf32>
    %13 = arith.mulf %8, %8 : vector<128x8xf32>
    %cst_7 = arith.constant dense<0.000000e+00> : vector<8xf32>
    %14 = vector.multi_reduction <add>, %13, %cst_7 [0] : vector<128x8xf32> to vector<8xf32>
    %15 = vector.shape_cast %14 : vector<8xf32> to vector<1x8xf32>
    %cst_8 = arith.constant 1.280000e+02 : f32
    %16 = vector.broadcast %cst_8 : f32 to vector<1x8xf32>
    %17 = arith.divf %15, %16 : vector<1x8xf32>
    %18 = arith.mulf %12, %12 : vector<1x8xf32>
    %19 = arith.subf %17, %18 : vector<1x8xf32>
    %cst_9 = arith.constant 0.000000e+00 : f32
    %20 = vector.broadcast %cst_9 : f32 to vector<1x8xf32>
    %21 = arith.maximumf %19, %20 : vector<1x8xf32>
    %cst_10 = arith.constant 9.99999974E-6 : f32
    %22 = vector.broadcast %cst_10 : f32 to vector<1x8xf32>
    %23 = arith.addf %21, %22 : vector<1x8xf32>
    %24 = math.rsqrt %23 : vector<1x8xf32>
    %25 = arith.mulf %1, %24 : vector<1x8xf32>
    %26 = vector.broadcast %25 : vector<1x8xf32> to vector<128x8xf32>
    %27 = arith.mulf %8, %26 : vector<128x8xf32>
    %28 = arith.mulf %12, %25 : vector<1x8xf32>
    %29 = arith.subf %2, %28 : vector<1x8xf32>
    %30 = vector.broadcast %29 : vector<1x8xf32> to vector<128x8xf32>
    %31 = arith.addf %27, %30 : vector<128x8xf32>
    %cst_11 = arith.constant 3.000000e-01 : f32
    %32 = vector.broadcast %cst_11 : f32 to vector<128x8xf32>
    %33 = arith.mulf %32, %31 : vector<128x8xf32>
    %34 = arith.maximumf %31, %33 : vector<128x8xf32>
    %35 = arith.truncf %34 : vector<128x8xf32> to vector<128x8xbf16>
    %c0_12 = arith.constant 0 : index
    %c0_13 = arith.constant 0 : index
    %36 = vector.load %arg3[%c0_12, %c0_13] : memref<8x128xbf16, #tpu.memory_space<vmem>>, vector<8x128xbf16>
    %cst_14 = arith.constant dense<0.000000e+00> : vector<128x128xf32>
    %37 = tpu.matmul %35, %36, %cst_14 {dimension_numbers = #tpu.dot_dimension_numbers<[1], [0], [0], [1], [0, 0, 1, 1], [], []>} : vector<128x8xbf16>, vector<8x128xbf16>, vector<128x128xf32> -> vector<128x128xf32>
    %c0_15 = arith.constant 0 : index
    %c0_16 = arith.constant 0 : index
    %38 = vector.load %arg4[%c0_15, %c0_16] : memref<512x128xbf16, #tpu.memory_space<vmem>>, vector<512x128xbf16>
    %39 = arith.truncf %37 : vector<128x128xf32> to vector<128x128xbf16>
    %cst_17 = arith.constant dense<0.000000e+00> : vector<512x128xf32>
    %40 = tpu.matmul %38, %39, %cst_17 {dimension_numbers = #tpu.dot_dimension_numbers<[1], [0], [0], [1], [0, 0, 1, 1], [], []>} : vector<512x128xbf16>, vector<128x128xbf16>, vector<512x128xf32> -> vector<512x128xf32>
    %c0_18 = arith.constant 0 : index
    %c0_19 = arith.constant 0 : index
    %41 = vector.load %arg6[%c0_18, %c0_19] : memref<32x512xbf16, #tpu.memory_space<vmem>>, vector<32x512xbf16>
    %c0_20 = arith.constant 0 : index
    %c0_21 = arith.constant 0 : index
    %42 = vector.load %arg5[%c0_20, %c0_21] : memref<512x128xf32, #tpu.memory_space<vmem>>, vector<512x128xf32>
    %43 = arith.mulf %42, %40 : vector<512x128xf32>
    %44 = arith.truncf %43 : vector<512x128xf32> to vector<512x128xbf16>
    %cst_22 = arith.constant dense<0.000000e+00> : vector<32x128xf32>
    %45 = tpu.matmul %41, %44, %cst_22 {dimension_numbers = #tpu.dot_dimension_numbers<[1], [0], [0], [1], [0, 0, 1, 1], [], []>} : vector<32x512xbf16>, vector<512x128xbf16>, vector<32x128xf32> -> vector<32x128xf32>
    %46 = arith.truncf %45 : vector<32x128xf32> to vector<32x128xbf16>
    %c0_23 = arith.constant 0 : index
    %c0_24 = arith.constant 0 : index
    %47 = vector.load %arg7[%c0_23, %c0_24] : memref<128x16xbf16, #tpu.memory_space<vmem>>, vector<128x16xbf16>
    %cst_25 = arith.constant dense<0.000000e+00> : vector<32x16xf32>
    %48 = tpu.matmul %46, %47, %cst_25 {dimension_numbers = #tpu.dot_dimension_numbers<[1], [0], [0], [1], [0, 0, 1, 1], [], []>} : vector<32x128xbf16>, vector<128x16xbf16>, vector<32x16xf32> -> vector<32x16xf32>
    %cst_26 = arith.constant dense<0.000000e+00> : vector<16xf32>
    %49 = vector.multi_reduction <add>, %48, %cst_26 [0] : vector<32x16xf32> to vector<16xf32>
    %50 = vector.shape_cast %49 : vector<16xf32> to vector<1x16xf32>
    %cst_27 = arith.constant 3.200000e+01 : f32
    %51 = vector.broadcast %cst_27 : f32 to vector<1x16xf32>
    %52 = arith.divf %50, %51 : vector<1x16xf32>
    %53 = arith.mulf %48, %48 : vector<32x16xf32>
    %cst_28 = arith.constant dense<0.000000e+00> : vector<16xf32>
    %54 = vector.multi_reduction <add>, %53, %cst_28 [0] : vector<32x16xf32> to vector<16xf32>
    %55 = vector.shape_cast %54 : vector<16xf32> to vector<1x16xf32>
    %cst_29 = arith.constant 3.200000e+01 : f32
    %56 = vector.broadcast %cst_29 : f32 to vector<1x16xf32>
    %57 = arith.divf %55, %56 : vector<1x16xf32>
    %58 = arith.mulf %52, %52 : vector<1x16xf32>
    %59 = arith.subf %57, %58 : vector<1x16xf32>
    %cst_30 = arith.constant 0.000000e+00 : f32
    %60 = vector.broadcast %cst_30 : f32 to vector<1x16xf32>
    %61 = arith.maximumf %59, %60 : vector<1x16xf32>
    %cst_31 = arith.constant 9.99999974E-6 : f32
    %62 = vector.broadcast %cst_31 : f32 to vector<1x16xf32>
    %63 = arith.addf %61, %62 : vector<1x16xf32>
    %64 = math.rsqrt %63 : vector<1x16xf32>
    %65 = arith.mulf %3, %64 : vector<1x16xf32>
    %66 = vector.broadcast %65 : vector<1x16xf32> to vector<32x16xf32>
    %67 = arith.mulf %48, %66 : vector<32x16xf32>
    %68 = arith.mulf %52, %65 : vector<1x16xf32>
    %69 = arith.subf %4, %68 : vector<1x16xf32>
    %70 = vector.broadcast %69 : vector<1x16xf32> to vector<32x16xf32>
    %71 = arith.addf %67, %70 : vector<32x16xf32>
    %cst_32 = arith.constant 3.000000e-01 : f32
    %72 = vector.broadcast %cst_32 : f32 to vector<32x16xf32>
    %73 = arith.mulf %72, %71 : vector<32x16xf32>
    %74 = arith.maximumf %71, %73 : vector<32x16xf32>
    %75 = arith.truncf %74 : vector<32x16xf32> to vector<32x16xbf16>
    %c0_33 = arith.constant 0 : index
    %c0_34 = arith.constant 0 : index
    %76 = vector.load %arg8[%c0_33, %c0_34] : memref<16x256xbf16, #tpu.memory_space<vmem>>, vector<16x256xbf16>
    %cst_35 = arith.constant dense<0.000000e+00> : vector<32x256xf32>
    %77 = tpu.matmul %75, %76, %cst_35 {dimension_numbers = #tpu.dot_dimension_numbers<[1], [0], [0], [1], [0, 0, 1, 1], [], []>} : vector<32x16xbf16>, vector<16x256xbf16>, vector<32x256xf32> -> vector<32x256xf32>
    %c0_36 = arith.constant 0 : index
    %c0_37 = arith.constant 0 : index
    %78 = vector.load %arg10[%c0_36, %c0_37] : memref<2x32xbf16, #tpu.memory_space<vmem>>, vector<2x32xbf16>
    %c0_38 = arith.constant 0 : index
    %c0_39 = arith.constant 0 : index
    %79 = vector.load %arg9[%c0_38, %c0_39] : memref<32x256xf32, #tpu.memory_space<vmem>>, vector<32x256xf32>
    %80 = arith.mulf %79, %77 : vector<32x256xf32>
    %81 = arith.truncf %80 : vector<32x256xf32> to vector<32x256xbf16>
    %cst_40 = arith.constant dense<0.000000e+00> : vector<2x256xf32>
    %82 = tpu.matmul %78, %81, %cst_40 {dimension_numbers = #tpu.dot_dimension_numbers<[1], [0], [0], [1], [0, 0, 1, 1], [], []>} : vector<2x32xbf16>, vector<32x256xbf16>, vector<2x256xf32> -> vector<2x256xf32>
    %83 = arith.truncf %82 : vector<2x256xf32> to vector<2x256xbf16>
    %c0_41 = arith.constant 0 : index
    %c0_42 = arith.constant 0 : index
    %84 = vector.load %arg11[%c0_41, %c0_42] : memref<256x256xbf16, #tpu.memory_space<vmem>>, vector<256x256xbf16>
    %cst_43 = arith.constant dense<0.000000e+00> : vector<2x256xf32>
    %85 = tpu.matmul %83, %84, %cst_43 {dimension_numbers = #tpu.dot_dimension_numbers<[1], [0], [0], [1], [0, 0, 1, 1], [], []>} : vector<2x256xbf16>, vector<256x256xbf16>, vector<2x256xf32> -> vector<2x256xf32>
    %cst_44 = arith.constant 3.000000e-01 : f32
    %86 = vector.broadcast %cst_44 : f32 to vector<2x256xf32>
    %87 = arith.mulf %86, %85 : vector<2x256xf32>
    %88 = arith.maximumf %85, %87 : vector<2x256xf32>
    %89 = arith.truncf %88 : vector<2x256xf32> to vector<2x256xbf16>
    %c0_45 = arith.constant 0 : index
    %c0_46 = arith.constant 0 : index
    %90 = vector.load %arg12[%c0_45, %c0_46] : memref<256x1xbf16, #tpu.memory_space<vmem>>, vector<256x1xbf16>
    %cst_47 = arith.constant dense<0.000000e+00> : vector<2x1xf32>
    %91 = tpu.matmul %89, %90, %cst_47 {dimension_numbers = #tpu.dot_dimension_numbers<[1], [0], [0], [1], [0, 0, 1, 1], [], []>} : vector<2x256xbf16>, vector<256x1xbf16>, vector<2x1xf32> -> vector<2x1xf32>
    %92 = vector.broadcast %5 : vector<1x1xf32> to vector<2x1xf32>
    %93 = arith.addf %91, %92 : vector<2x1xf32>
    %94 = math.absf %93 : vector<2x1xf32>
    %cst_48 = arith.constant 0.000000e+00 : f32
    %95 = vector.broadcast %cst_48 : f32 to vector<2x1xf32>
    %96 = arith.subf %95, %94 : vector<2x1xf32>
    %97 = math.exp %96 : vector<2x1xf32>
    %cst_49 = arith.constant 0.000000e+00 : f32
    %98 = vector.broadcast %cst_49 : f32 to vector<2x1xf32>
    %99 = arith.cmpf oge, %93, %98 : vector<2x1xf32>
    %cst_50 = arith.constant 1.000000e+00 : f32
    %100 = vector.broadcast %cst_50 : f32 to vector<2x1xf32>
    %101 = arith.addf %100, %97 : vector<2x1xf32>
    %cst_51 = arith.constant 1.000000e+00 : f32
    %102 = vector.broadcast %cst_51 : f32 to vector<2x1xf32>
    %103 = arith.divf %102, %101 : vector<2x1xf32>
    %cst_52 = arith.constant 1.000000e+00 : f32
    %104 = vector.broadcast %cst_52 : f32 to vector<2x1xf32>
    %105 = arith.addf %104, %97 : vector<2x1xf32>
    %106 = arith.divf %97, %105 : vector<2x1xf32>
    %107 = arith.select %99, %103, %106 : vector<2x1xi1>, vector<2x1xf32>
    %c0_53 = arith.constant 0 : index
    %c0_54 = arith.constant 0 : index
    %108 = vector.load %arg14[%c0_53, %c0_54] : memref<2x1xf32, #tpu.memory_space<vmem>>, vector<2x1xf32>
    tpu.vector_store %arg14[%c0_53, %c0_54], %107 {strides = array<i32>} : memref<2x1xf32, #tpu.memory_space<vmem>>, vector<2x1xf32>,
    return
  }
  func.func @transform_0(%arg0: i32) -> (i32, i32) {
    %c0_i32 = arith.constant 0 : i32
    %c0_i32_0 = arith.constant 0 : i32
    %c0_i32_1 = arith.constant 0 : i32
    return %c0_i32, %c0_i32_0 : i32, i32
  }
  func.func @transform_1(%arg0: i32) -> (i32, i32) {
    %c0_i32 = arith.constant 0 : i32
    %c0_i32_0 = arith.constant 0 : i32
    %c0_i32_1 = arith.constant 0 : i32
    return %c0_i32, %c0_i32_0 : i32, i32
  }
  func.func @transform_2(%arg0: i32) -> (i32, i32) {
    %c0_i32 = arith.constant 0 : i32
    %c0_i32_0 = arith.constant 0 : i32
    %c0_i32_1 = arith.constant 0 : i32
    return %c0_i32, %c0_i32_0 : i32, i32
  }
  func.func @transform_3(%arg0: i32) -> (i32, i32) {
    %c0_i32 = arith.constant 0 : i32
    %c0_i32_0 = arith.constant 0 : i32
    %c0_i32_1 = arith.constant 0 : i32
    return %c0_i32, %c0_i32_0 : i32, i32
  }
  func.func @transform_4(%arg0: i32) -> (i32, i32) {
    %c0_i32 = arith.constant 0 : i32
    %c0_i32_0 = arith.constant 0 : i32
    %c0_i32_1 = arith.constant 0 : i32
    return %c0_i32, %c0_i32_0 : i32, i32
  }
  func.func @transform_5(%arg0: i32) -> (i32, i32) {
    %c0_i32 = arith.constant 0 : i32
    %c0_i32_0 = arith.constant 0 : i32
    %c0_i32_1 = arith.constant 0 : i32
    return %c0_i32, %c0_i32_0 : i32, i32
  }
  func.func @transform_6(%arg0: i32) -> (i32, i32) {
    %c0_i32 = arith.constant 0 : i32
    %c0_i32_0 = arith.constant 0 : i32
    %c0_i32_1 = arith.constant 0 : i32
    return %c0_i32, %c0_i32_0 : i32, i32
  }
  func.func @transform_7(%arg0: i32) -> (i32, i32) {
    %c0_i32 = arith.constant 0 : i32
    %c0_i32_0 = arith.constant 0 : i32
    %c0_i32_1 = arith.constant 0 : i32
    return %c0_i32, %c0_i32_0 : i32, i32
  }
  func.func @transform_8(%arg0: i32) -> (i32, i32) {
    %c0_i32 = arith.constant 0 : i32
    %c0_i32_0 = arith.constant 0 : i32
    %c0_i32_1 = arith.constant 0 : i32
    return %c0_i32, %c0_i32_0 : i32, i32
  }
  func.func @transform_9(%arg0: i32) -> (i32, i32) {
    %c0_i32 = arith.constant 0 : i32
    %c0_i32_0 = arith.constant 0 : i32
    %c0_i32_1 = arith.constant 0 : i32
    return %c0_i32, %c0_i32_0 : i32, i32
  }
  func.func @transform_10(%arg0: i32) -> (i32, i32) {
    %c0_i32 = arith.constant 0 : i32
    %c0_i32_0 = arith.constant 0 : i32
    %c0_i32_1 = arith.constant 0 : i32
    return %c0_i32, %c0_i32_0 : i32, i32
  }
  func.func @transform_11(%arg0: i32) -> (i32, i32) {
    %c0_i32 = arith.constant 0 : i32
    %c0_i32_0 = arith.constant 0 : i32
    %c0_i32_1 = arith.constant 0 : i32
    return %c0_i32, %c0_i32_0 : i32, i32
  }
  func.func @transform_12(%arg0: i32) -> (i32, i32) {
    %c0_i32 = arith.constant 0 : i32
    %c0_i32_0 = arith.constant 0 : i32
    %c0_i32_1 = arith.constant 0 : i32
    return %c0_i32, %c0_i32_0 : i32, i32
  }
  func.func @transform_13(%arg0: i32) -> (i32, i32) {
    %c0_i32 = arith.constant 0 : i32
    %c0_i32_0 = arith.constant 0 : i32
    %c0_i32_1 = arith.constant 0 : i32
    return %c0_i32, %c0_i32_0 : i32, i32
  }
}

</mosaic_0001>

<bundles_post_ra>
// kernel: discriminator_forward.1
= control target key start
LH: loop header
LB: loop body
LE: loop exit
PB: predicated region body
PF: predicated region fallthrough
CT: control target
= control target key end

     0   :  { %vm271_vm0 = vcmask 64512   ;;  %s2842_s23 = smov 8   ;;  %vm502_vm1 = vcmask 1043456   ;;  %s2843_s26 = smov 120   ;;  %vm1577_vm2 = vcmask 130048   ;;  %vm1781_vm3 = vcmask 261120   ;;  %s3821_s1 = inlined_call_operand.vmem [shape: bf16[128,8], index: 1, kind: input, shape index: {}]   ;;  %s3822_s0 = inlined_call_operand.vmem [shape: bf16[128,128], index: 0, kind: input, shape index: {}]   ;;  %s3823_s12 = inlined_call_operand.vmem [shape: f32[1,128], index: 12, kind: input, shape index: {}]   ;;  %s3824_s2 = inlined_call_operand.vmem [shape: bf16[8,128], index: 2, kind: input, shape index: {}]   ;;  %s3825_s3 = inlined_call_operand.vmem [shape: bf16[512,128], index: 3, kind: input, shape index: {}]   ;;  %s3826_s5 = inlined_call_operand.vmem [shape: bf16[32,512], index: 5, kind: input, shape index: {}]   ;;  %s3827_s4 = inlined_call_operand.vmem [shape: f32[512,128], index: 4, kind: input, shape index: {}]   ;;  %s3828_s6 = inlined_call_operand.vmem [shape: bf16[128,16], index: 6, kind: input, shape index: {}]   ;;  %s3829_s7 = inlined_call_operand.vmem [shape: bf16[16,256], index: 7, kind: input, shape index: {}]   ;;  %s3830_s10 = inlined_call_operand.vmem [shape: bf16[256,256], index: 10, kind: input, shape index: {}]   ;;  %s3831_s8 = inlined_call_operand.vmem [shape: f32[32,256], index: 8, kind: input, shape index: {}]   ;;  %s3832_s9 = inlined_call_operand.vmem [shape: bf16[2,32], index: 9, kind: input, shape index: {}]   ;;  %s3833_s11 = inlined_call_operand.vmem [shape: bf16[256,1], index: 11, kind: input, shape index: {}]   ;;  %s3834_s13 = inlined_call_operand.vmem [shape: f32[2,1], index: 13, kind: output, shape index: {}]  }
   0x1   :  { %v2697_v0 = vld [vmem:[%s3821_s1] sm:$0xff]   ;;  %v2698_v1 = vld [vmem:[%s3821_s1 + $0x8] sm:$0xff]   ;;  %v2699_v2 = vld [vmem:[%s3821_s1 + $0x10] sm:$0xff]   ;;  %s2845_s22 = smov 112   ;;  %s2849_s15 = smov 80   ;;  %vm2253_vm4 = vcmask 1024  }
   0x2   :  { %2537 = vmatprep.subr.bf16.mxu0 %v2697_v0  ;;  %v2700_v3 = vld [vmem:[%s3821_s1 + $0x18] sm:$0xff]   ;;  %v2705_v4 = vld [vmem:[%s3822_s0] sm:$0xff]   ;;  %v2702_v6 = vld [vmem:[%s3821_s1 + $0x28] sm:$0xff]  }
   0x3   :  { %2538 = vmatpush3.bf16.msra.mxu0 %v2697_v0  ;;  %2553 = vmatprep.mubr.bf16.mxu0 %v2705_v4  ;;  %v2701_v5 = vld [vmem:[%s3821_s1 + $0x20] sm:$0xff]   ;;  %v2703_v7 = vld [vmem:[%s3821_s1 + $0x30] sm:$0xff]   ;;  %v2704_v8 = vld [vmem:[%s3821_s1 + $0x38] sm:$0xff]  }
   0x4   :  { %2539 = vmatprep.subr.bf16.mxu0 %v2698_v1  ;;  %v2706_v9 = vld [vmem:[%s3822_s0 + $0x8] sm:$0xff]   ;;  %v2707_v10 = vld [vmem:[%s3822_s0 + $0x10] sm:$0xff]   ;;  %v2708_v11 = vld [vmem:[%s3822_s0 + $0x18] sm:$0xff]  }
   0x5   :  { %v2709_v12 = vld [vmem:[%s3822_s0 + $0x20] sm:$0xff]   ;;  %v2710_v13 = vld [vmem:[%s3822_s0 + $0x28] sm:$0xff]   ;;  %v2711_v14 = vld [vmem:[%s3822_s0 + $0x30] sm:$0xff]  }
   0x6   :  { %v2712_v15 = vld [vmem:[%s3822_s0 + $0x38] sm:$0xff]  }
   0x7   :  { %2540 = vmatpush3.bf16.msra.mxu0 %v2698_v1 }
   0x8   :  { %2541 = vmatprep.subr.bf16.mxu0 %v2699_v2 }
   0xb   :  { %2542 = vmatpush3.bf16.msra.mxu0 %v2699_v2 }
   0xc   :  { %2543 = vmatprep.subr.bf16.mxu0 %v2700_v3 }
   0xf   :  { %2544 = vmatpush3.bf16.msra.mxu0 %v2700_v3 }
  0x10   :  { %2545 = vmatprep.subr.bf16.mxu0 %v2701_v5 }
  0x13   :  { %2546 = vmatpush3.bf16.msra.mxu0 %v2701_v5 }
  0x14   :  { %2547 = vmatprep.subr.bf16.mxu0 %v2702_v6 }
  0x17   :  { %2548 = vmatpush3.bf16.msra.mxu0 %v2702_v6 }
  0x18   :  { %2549 = vmatprep.subr.bf16.mxu0 %v2703_v7 }
  0x1b   :  { %2550 = vmatpush3.bf16.msra.mxu0 %v2703_v7 }
  0x1c   :  { %2551 = vmatprep.subr.bf16.mxu0 %v2704_v8 }
  0x1f   :  { %2552 = vmatpush3.bf16.msra.mxu0 %v2704_v8 }
  0x22   :  { %2554 = vmatmul.mubr.bf16.vlgmr.msra.gmra.mrb[0].mxu0 %v2706_v9 }
  0x23   :  { %2557 = vmatprep.mubr.bf16.mxu0 %v2707_v10 }
  0x2a   :  { %2558 = vmatmul.mubr.bf16.gmra.mrb[4].mxu0 %v2708_v11 }
  0x2b   :  { %2561 = vmatprep.mubr.bf16.mxu0 %v2709_v12 }
  0x32   :  { %2562 = vmatmul.mubr.bf16.gmra.mrb[8].mxu0 %v2710_v13 }
  0x33   :  { %2565 = vmatprep.mubr.bf16.mxu0 %v2711_v14 }
  0x3a   :  { %2566 = vmatmul.mubr.bf16.gmra.mrb[12].mxu0 %v2712_v15 }
  0xf5   :  { %v2968_v16 = vpop.f32.mrb[0].mxu0 }
  0xf6   :  { %v2970_v17 = vpop.f32.mrb[1].mxu0  ;;  %v313_v21 = vmul.f32 %v2968_v16, %v2968_v16  ;;  %v275_v26 = vsel %vm271_vm0, %v2968_v16, 0.0 }
  0xf7   :  { %v311_v18 = vmul.f32 %v2970_v17, %v2970_v17  ;;  %v2974_v19 = vpop.f32.mrb[2].mxu0  ;;  %v272_v22 = vsel %vm271_vm0, %v2970_v17, 0.0 }
  0xf8   :  { %v2976_v20 = vpop.f32.mrb[3].mxu0  ;;  %v314_v28 = vmul.f32 %v2974_v19, %v2974_v19  ;;  %v330_v32 = vsel %vm271_vm0, %v313_v21, 0.0  ;;  %v277_v33 = vsel %vm271_vm0, %v2974_v19, 0.0 }
  0xf9   :  { %v273_v23 = vsel %vm271_vm0, %v2976_v20, 0.0  ;;  %v312_v24 = vmul.f32 %v2976_v20, %v2976_v20  ;;  %v327_v27 = vsel %vm271_vm0, %v311_v18, 0.0 }
  0xfa   :  { %v274_v25 = vadd.f32 %v273_v23, %v272_v22  ;;  %v332_v38 = vsel %vm271_vm0, %v314_v28, 0.0 }
  0xfb   :  { %v328_v29 = vsel %vm271_vm0, %v312_v24, 0.0 }
  0xfc   :  { %v276_v30 = vadd.f32 %v275_v26, %v274_v25  ;;  %v329_v31 = vadd.f32 %v328_v29, %v327_v27 }
  0xfd   :  { %v2995_v34 = vpop.f32.mrb[4].mxu0 }
  0xfe   :  { %v331_v35 = vadd.f32 %v330_v32, %v329_v31  ;;  %v2997_v36 = vpop.f32.mrb[5].mxu0  ;;  %v278_v37 = vadd.f32 %v277_v33, %v276_v30  ;;  %v317_v45 = vmul.f32 %v2995_v34, %v2995_v34  ;;  %v283_v51 = vsel %vm271_vm0, %v2995_v34, 0.0 }
  0xff   :  { %v279_v39 = vsel %vm271_vm0, %v2997_v36, 0.0  ;;  %v315_v40 = vmul.f32 %v2997_v36, %v2997_v36  ;;  %v3004_v41 = vpop.f32.mrb[6].mxu0 }
 0x100   :  { %v280_v42 = vadd.f32 %v279_v39, %v278_v37  ;;  %v333_v43 = vadd.f32 %v332_v38, %v331_v35  ;;  %v3006_v44 = vpop.f32.mrb[7].mxu0  ;;  %v318_v52 = vmul.f32 %v3004_v41, %v3004_v41  ;;  %v338_v56 = vsel %vm271_vm0, %v317_v45, 0.0 }
 0x101   :  { %v334_v46 = vsel %vm271_vm0, %v315_v40, 0.0  ;;  %v281_v47 = vsel %vm271_vm0, %v3006_v44, 0.0  ;;  %v316_v48 = vmul.f32 %v3006_v44, %v3006_v44  ;;  %v285_v57 = vsel %vm271_vm0, %v3004_v41, 0.0 }
 0x102   :  { %v335_v49 = vadd.f32 %v334_v46, %v333_v43  ;;  %v282_v50 = vadd.f32 %v281_v47, %v280_v42  ;;  %v340_v62 = vsel %vm271_vm0, %v318_v52, 0.0 }
 0x103   :  { %v336_v53 = vsel %vm271_vm0, %v316_v48, 0.0 }
 0x104   :  { %v284_v54 = vadd.f32 %v283_v51, %v282_v50  ;;  %v337_v55 = vadd.f32 %v336_v53, %v335_v49 }
 0x105   :  { %v3023_v58 = vpop.f32.mrb[8].mxu0 }
 0x106   :  { %v339_v59 = vadd.f32 %v338_v56, %v337_v55  ;;  %v3025_v60 = vpop.f32.mrb[9].mxu0  ;;  %v286_v61 = vadd.f32 %v285_v57, %v284_v54  ;;  %v321_v5 = vmul.f32 %v3023_v58, %v3023_v58  ;;  %v291_v11 = vsel %vm271_vm0, %v3023_v58, 0.0 }
 0x107   :  { %v287_v63 = vsel %vm271_vm0, %v3025_v60, 0.0  ;;  %v319_v0 = vmul.f32 %v3025_v60, %v3025_v60  ;;  %v3032_v1 = vpop.f32.mrb[10].mxu0 }
 0x108   :  { %v288_v2 = vadd.f32 %v287_v63, %v286_v61  ;;  %v341_v3 = vadd.f32 %v340_v62, %v339_v59  ;;  %v3034_v4 = vpop.f32.mrb[11].mxu0  ;;  %v322_v12 = vmul.f32 %v3032_v1, %v3032_v1  ;;  %v346_v18 = vsel %vm271_vm0, %v321_v5, 0.0 }
 0x109   :  { %v342_v6 = vsel %vm271_vm0, %v319_v0, 0.0  ;;  %v289_v7 = vsel %vm271_vm0, %v3034_v4, 0.0  ;;  %v320_v8 = vmul.f32 %v3034_v4, %v3034_v4  ;;  %v293_v21 = vsel %vm271_vm0, %v3032_v1, 0.0 }
 0x10a   :  { %v343_v9 = vadd.f32 %v342_v6, %v341_v3  ;;  %v290_v10 = vadd.f32 %v289_v7, %v288_v2  ;;  %v348_v26 = vsel %vm271_vm0, %v322_v12, 0.0  ;;  %v372_v12 = vlaneseq }
 0x10b   :  { %v344_v13 = vsel %vm271_vm0, %v320_v8, 0.0 }
 0x10c   :  { %v292_v14 = vadd.f32 %v291_v11, %v290_v10  ;;  %v345_v15 = vadd.f32 %v344_v13, %v343_v9  ;;  %v2841_v13 = vmov 1966171168  }
 0x10d   :  { %v3051_v22 = vpop.f32.mrb[12].mxu0 }
 0x10e   :  { %v347_v23 = vadd.f32 %v346_v18, %v345_v15  ;;  %v3053_v24 = vpop.f32.mrb[13].mxu0  ;;  %v294_v25 = vadd.f32 %v293_v21, %v292_v14  ;;  %v325_v33 = vmul.f32 %v3051_v22, %v3051_v22  ;;  %v299_v42 = vsel %vm271_vm0, %v3051_v22, 0.0  ;;  %v45_v21 = vld [vmem:[%s3823_s12] sm:$0x1] }
 0x10f   :  { %v295_v27 = vsel %vm271_vm0, %v3053_v24, 0.0  ;;  %v323_v28 = vmul.f32 %v3053_v24, %v3053_v24  ;;  %v3060_v29 = vpop.f32.mrb[14].mxu0  ;;  %v396_v14 = vunpack.c.l.s4 %v2841_v13  ;;  %v373_v15 = vshrl.u32 %v372_v12, 7 }
 0x110   :  { %v296_v30 = vadd.f32 %v295_v27, %v294_v25  ;;  %v349_v31 = vadd.f32 %v348_v26, %v347_v23  ;;  %v259_v32 = vpop.f32.mrb[15].mxu0  ;;  %v326_v43 = vmul.f32 %v3060_v29, %v3060_v29  ;;  %v354_v48 = vsel %vm271_vm0, %v325_v33, 0.0 }
 0x111   :  { %v350_v35 = vsel %vm271_vm0, %v323_v28, 0.0  ;;  %v297_v37 = vsel %vm271_vm0, %v259_v32, 0.0  ;;  %v324_v38 = vmul.f32 %v259_v32, %v259_v32  ;;  %v301_v49 = vsel %vm271_vm0, %v3060_v29, 0.0 }
 0x112   :  { %v351_v39 = vadd.f32 %v350_v35, %v349_v31  ;;  %v298_v40 = vadd.f32 %v297_v37, %v296_v30  ;;  %v356_v52 = vsel %vm271_vm0, %v326_v43, 0.0  ;;  %v397_v18 = vunpack.c.0.s8 %v396_v14 }
 0x113   :  { %v352_v45 = vsel %vm271_vm0, %v324_v38, 0.0  ;;  %v3078_v23 = vsub.s32 0, %v373_v15 }
 0x114   :  { %v300_v46 = vadd.f32 %v299_v42, %v298_v40  ;;  %v353_v47 = vadd.f32 %v352_v45, %v351_v39  ;;  %v3080_v27 = vsub.s32 %v397_v18, %v373_v15 }
 0x116   :  { %v302_v50 = vadd.f32 %v301_v49, %v300_v46  ;;  %v355_v51 = vadd.f32 %v354_v48, %v353_v47 }
 0x118   :  { %v303_v53 = vrot.slane %v302_v50, 4  ;;  %v357_v54 = vadd.f32 %v356_v52, %v355_v51 }
 0x11a   :  { %v304_v55 = vadd.f32 %v303_v53, %v302_v50  ;;  %v358_v56 = vrot.slane %v357_v54, 4 }
 0x11c   :  { %v305_v57 = vrot.slane %v304_v55, 2  ;;  %v359_v59 = vadd.f32 %v358_v56, %v357_v54 }
 0x11e   :  { %v306_v61 = vadd.f32 %v305_v57, %v304_v55  ;;  %v360_v62 = vrot.slane %v359_v59, 2 }
 0x120   :  { %v307_v63 = vrot.slane %v306_v61, 1  ;;  %v361_v0 = vadd.f32 %v360_v62, %v359_v59 }
 0x122   :  { %v308_v2 = vadd.f32 %v307_v63, %v306_v61  ;;  %v362_v3 = vrot.slane %v361_v0, 1 }
 0x124   :  { %v310_v5 = vmul.f32 0.0078125, %v308_v2  ;;  %v363_v6 = vadd.f32 %v362_v3, %v361_v0 }
 0x126   :  { %v364_v7 = vmul.f32 0.0078125, %v363_v6  ;;  %v365_v8 = vmul.f32 %v310_v5, %v310_v5 }
 0x128   :  { %v366_v9 = vsub.f32 %v364_v7, %v365_v8 }
 0x12a   :  { %v367_v10 = vmax.f32 %v366_v9, 0.0 }
 0x12c   :  { %v368_v11 = vadd.f32 1e-05, %v367_v10 }
 0x12e   :  { %2832 = vrsqrt.f32 %v368_v11 }
 0x138   :  { %v2833_v25 = vpop.eup %2832 }
 0x139   :  { %v370_v26 = vmul.f32 %v2833_v25, %v45_v21 }
 0x13b   :  { %v375_v28 = vrot.slane %v370_v26, %v3078_v23  ;;  %v393_v30 = vmul.f32 %v370_v26, %v310_v5 }
 0x13d   :  { %v3083_v31 = vmul.f32 %v375_v28, %v259_v32  ;;  %v401_v33 = vrot.slane %v393_v30, %v3080_v27  ;;  %v377_v35 = vmul.f32 %v375_v28, %v2970_v17  ;;  %v378_v37 = vmul.f32 %v375_v28, %v2976_v20 }
 0x13e   :  { %v379_v38 = vmul.f32 %v2968_v16, %v375_v28  ;;  %v380_v39 = vmul.f32 %v2974_v19, %v375_v28  ;;  %v381_v40 = vmul.f32 %v375_v28, %v2997_v36  ;;  %v382_v42 = vmul.f32 %v375_v28, %v3006_v44 }
 0x13f   :  { %v408_v43 = vrot.slane %v401_v33, %v3080_v27  ;;  %v383_v45 = vmul.f32 %v2995_v34, %v375_v28  ;;  %v384_v32 = vmul.f32 %v3004_v41, %v375_v28  ;;  %v385_v46 = vmul.f32 %v375_v28, %v3025_v60  ;;  %v477_v34 = vld [vmem:[%s3824_s2] sm:$0xf]  ;;  %s2848_s2 = smov 96  }
 0x140   :  { %v386_v17 = vmul.f32 %v375_v28, %v3034_v4  ;;  %v387_v20 = vmul.f32 %v3023_v58, %v375_v28  ;;  %v388_v16 = vmul.f32 %v3032_v1, %v375_v28  ;;  %v389_v19 = vmul.f32 %v375_v28, %v3053_v24  ;;  %2687 = vmatprep.subr.msk.bf16.mxu1 %vm502_vm1, %v477_v34 }
 0x141   :  { %409 = vrot.lane.b32.xlu0 %v408_v43, %s2842_s23  ;;  %v391_v36 = vmul.f32 %v3051_v22, %v375_v28  ;;  %v392_v44 = vmul.f32 %v3060_v29, %v375_v28  ;;  %v504_v41 = vsel %vm502_vm1, %v477_v34, 0  ;;  %s2846_s23 = smov 32  }
 0x142   :  { %2570 = vmatpush3.bf16.msra.mxu1 %v504_v41 }
 0x1b3   :  { %v410_v60 = vpop.permute.xlu0 %409 }
 0x1b4   :  { %v412_v58 = vsub.f32 %v45_v21, %v410_v60 }
 0x1b6   :  { %v417_v1 = vrot.slane %v412_v58, %v3078_v23 }
 0x1b8   :  { %418 = vrot.lane.b32.xlu0 %v417_v1, %s2843_s26 }
 0x22a   :  { %v419_v4 = vpop.permute.xlu0 %418 }
 0x22b   :  { %v421_v24 = vadd.f32 %v419_v4, %v377_v35  ;;  %v422_v47 = vadd.f32 %v419_v4, %v378_v37  ;;  %v423_v22 = vadd.f32 %v419_v4, %v379_v38  ;;  %v424_v48 = vadd.f32 %v419_v4, %v380_v39 }
 0x22c   :  { %v425_v29 = vadd.f32 %v419_v4, %v381_v40  ;;  %v426_v49 = vadd.f32 %v419_v4, %v382_v42  ;;  %v427_v50 = vadd.f32 %v419_v4, %v383_v45  ;;  %v428_v51 = vadd.f32 %v419_v4, %v384_v32 }
 0x22d   :  { %v437_v52 = vmul.f32 0.3, %v421_v24  ;;  %v438_v53 = vmul.f32 0.3, %v422_v47  ;;  %v439_v54 = vmul.f32 0.3, %v423_v22  ;;  %v429_v55 = vadd.f32 %v419_v4, %v385_v46 }
 0x22e   :  { %v440_v56 = vmul.f32 0.3, %v424_v48  ;;  %v441_v57 = vmul.f32 0.3, %v425_v29  ;;  %v442_v59 = vmul.f32 0.3, %v426_v49  ;;  %v430_v61 = vadd.f32 %v419_v4, %v386_v17 }
 0x22f   :  { %v453_v62 = vmax.f32 %v421_v24, %v437_v52  ;;  %v454_v63 = vmax.f32 %v422_v47, %v438_v53  ;;  %v455_v0 = vmax.f32 %v423_v22, %v439_v54  ;;  %v443_v2 = vmul.f32 0.3, %v427_v50 }
 0x230   :  { %v456_v3 = vmax.f32 %v424_v48, %v440_v56  ;;  %v457_v5 = vmax.f32 %v425_v29, %v441_v57  ;;  %v458_v6 = vmax.f32 %v426_v49, %v442_v59  ;;  %v444_v7 = vmul.f32 0.3, %v428_v51 }
 0x231   :  { %v469_v8 = vpack.c.bf16 %v454_v63, %v453_v62  ;;  %v459_v9 = vmax.f32 %v427_v50, %v443_v2  ;;  %v445_v10 = vmul.f32 0.3, %v429_v55  ;;  %v446_v11 = vmul.f32 0.3, %v430_v61  ;;  %v2714_v2 = vld [vmem:[%s3825_s3 + $0x8] sm:$0xff]  }
 0x232   :  { %v470_v12 = vpack.c.bf16 %v456_v3, %v455_v0  ;;  %v471_v13 = vpack.c.bf16 %v458_v6, %v457_v5  ;;  %v460_v14 = vmax.f32 %v428_v51, %v444_v7  ;;  %v431_v15 = vadd.f32 %v419_v4, %v387_v20  ;;  %v2715_v3 = vld [vmem:[%s3825_s3 + $0x10] sm:$0xff]   ;;  %v2716_v5 = vld [vmem:[%s3825_s3 + $0x18] sm:$0xff]   ;;  %v2717_v6 = vld [vmem:[%s3825_s3 + $0x20] sm:$0xff]  }
 0x233   :  { %2571 = vmatprep.mubr.msk.bf16.mxu1 %vm271_vm0, %v469_v8  ;;  %v461_v18 = vmax.f32 %v429_v55, %v445_v10  ;;  %v462_v21 = vmax.f32 %v430_v61, %v446_v11  ;;  %v432_v25 = vadd.f32 %v419_v4, %v388_v16  ;;  %v433_v26 = vadd.f32 %v419_v4, %v389_v19  ;;  %v2718_v7 = vld [vmem:[%s3825_s3 + $0x28] sm:$0xff]   ;;  %v2719_v8 = vld [vmem:[%s3825_s3 + $0x30] sm:$0xff]   ;;  %v2721_v10 = vld [vmem:[%s3825_s3 + $0x40] sm:$0xff]  }
 0x234   :  { %2572 = vmatmul.mubr.msk.bf16.vlgmr.msra.gmra.mrb[0].mxu1 %vm271_vm0, %v470_v12  ;;  %v472_v28 = vpack.c.bf16 %v460_v14, %v459_v9  ;;  %v447_v30 = vmul.f32 0.3, %v431_v15  ;;  %v434_v33 = vadd.f32 %v419_v4, %v3083_v31  ;;  %v435_v35 = vadd.f32 %v419_v4, %v391_v36  ;;  %v2713_v31 = vld [vmem:[%s3825_s3] sm:$0xff]   ;;  %v2720_v9 = vld [vmem:[%s3825_s3 + $0x38] sm:$0xff]   ;;  %v2722_v11 = vld [vmem:[%s3825_s3 + $0x48] sm:$0xff]  }
 0x235   :  { %2575 = vmatprep.mubr.msk.bf16.mxu1 %vm271_vm0, %v471_v13  ;;  %v473_v37 = vpack.c.bf16 %v462_v21, %v461_v18  ;;  %v448_v38 = vmul.f32 0.3, %v432_v25  ;;  %v449_v39 = vmul.f32 0.3, %v433_v26  ;;  %v436_v40 = vadd.f32 %v419_v4, %v392_v44  ;;  %v2723_v12 = vld [vmem:[%s3825_s3 + $0x50] sm:$0xff]   ;;  %v2724_v13 = vld [vmem:[%s3825_s3 + $0x58] sm:$0xff]  }
 0x236   :  { %v463_v42 = vmax.f32 %v431_v15, %v447_v30  ;;  %v450_v43 = vmul.f32 0.3, %v434_v33  ;;  %v451_v45 = vmul.f32 0.3, %v435_v35  ;;  %v2725_v14 = vld [vmem:[%s3825_s3 + $0x60] sm:$0xff]   ;;  %v2726_v15 = vld [vmem:[%s3825_s3 + $0x68] sm:$0xff]  }
 0x237   :  { %v464_v32 = vmax.f32 %v432_v25, %v448_v38  ;;  %v465_v46 = vmax.f32 %v433_v26, %v449_v39  ;;  %v452_v17 = vmul.f32 0.3, %v436_v40  ;;  %v2727_v18 = vld [vmem:[%s3825_s3 + $0x70] sm:$0xff]   ;;  %v2728_v21 = vld [vmem:[%s3825_s3 + $0x78] sm:$0xff]   ;;  %v2729_v25 = vld [vmem:[%s3825_s3 + $0x80] sm:$0xff]  }
 0x238   :  { %v466_v20 = vmax.f32 %v434_v33, %v450_v43  ;;  %v467_v16 = vmax.f32 %v435_v35, %v451_v45  ;;  %v2730_v26 = vld [vmem:[%s3825_s3 + $0x88] sm:$0xff]   ;;  %v2732_v30 = vld [vmem:[%s3825_s3 + $0x98] sm:$0xff]   ;;  %v2733_v33 = vld [vmem:[%s3825_s3 + $0xa0] sm:$0xff]  }
 0x239   :  { %v474_v19 = vpack.c.bf16 %v464_v32, %v463_v42  ;;  %v468_v34 = vmax.f32 %v436_v40, %v452_v17  ;;  %v2734_v35 = vld [vmem:[%s3825_s3 + $0xa8] sm:$0xff]   ;;  %v2736_v38 = vld [vmem:[%s3825_s3 + $0xb8] sm:$0xff]   ;;  %v2737_v39 = vld [vmem:[%s3825_s3 + $0xc0] sm:$0xff]  }
 0x23a   :  { %v475_v41 = vpack.c.bf16 %v466_v20, %v465_v46  ;;  %v2738_v40 = vld [vmem:[%s3825_s3 + $0xc8] sm:$0xff]   ;;  %v2739_v42 = vld [vmem:[%s3825_s3 + $0xd0] sm:$0xff]   ;;  %v2740_v43 = vld [vmem:[%s3825_s3 + $0xd8] sm:$0xff]  }
 0x23b   :  { %v476_v60 = vpack.c.bf16 %v468_v34, %v467_v16  ;;  %v2741_v45 = vld [vmem:[%s3825_s3 + $0xe0] sm:$0xff]   ;;  %v2742_v32 = vld [vmem:[%s3825_s3 + $0xe8] sm:$0xff]   ;;  %v2743_v46 = vld [vmem:[%s3825_s3 + $0xf0] sm:$0xff]  }
 0x23c   :  { %2576 = vmatmul.mubr.msk.bf16.gmra.mrb[4].mxu1 %vm271_vm0, %v472_v28  ;;  %v2731_v28 = vld [vmem:[%s3825_s3 + $0x90] sm:$0xff]   ;;  %v2744_v17 = vld [vmem:[%s3825_s3 + $0xf8] sm:$0xff]  }
 0x23d   :  { %2579 = vmatprep.mubr.msk.bf16.mxu1 %vm271_vm0, %v473_v37  ;;  %v2735_v37 = vld [vmem:[%s3825_s3 + $0xb0] sm:$0xff]   ;;  %v1167_v34 = vld [vmem:[%s3827_s4 + $0x18] sm:$0xff] }
 0x23e   :  { %v2747_v20 = vld [vmem:[%s3826_s5 + $0x4] ss:$16 sps:$4 sm:$0xff]  }
 0x23f   :  { %1396 = vmatprep.mubr.bf16.mxu0 %v2747_v20  ;;  %v1181_v20 = vld [vmem:[%s3827_s4 + $0x88] sm:$0xff] }
 0x244   :  { %2580 = vmatmul.mubr.msk.bf16.gmra.mrb[8].mxu1 %vm271_vm0, %v474_v19  ;;  %v1166_v19 = vld [vmem:[%s3827_s4 + $0x10] sm:$0xff] }
 0x245   :  { %2583 = vmatprep.mubr.msk.bf16.mxu1 %vm271_vm0, %v475_v41 }
 0x24c   :  { %2584 = vmatmul.mubr.msk.bf16.gmra.mrb[12].mxu1 %vm271_vm0, %v476_v60  ;;  %v1164_v60 = vld [vmem:[%s3827_s4] sm:$0xff] }
 0x24d   :  { %2603 = vmatprep.mubr.bf16.mxu1 %v2713_v31  ;;  %v1165_v31 = vld [vmem:[%s3827_s4 + $0x8] sm:$0xff] }
 0x307   :  { %v2573_v36 = vpop.f32.mrb[0].mxu1 }
 0x308   :  { %v540_v44 = vpop.f32.mrb[1].mxu1 }
 0x309   :  { %v2574_v58 = vpop.f32.mrb[2].mxu1 }
 0x30a   :  { %v668_v1 = vpack.c.bf16 %v2574_v58, %v2573_v36  ;;  %v543_v4 = vpop.f32.mrb[3].mxu1 }
 0x30b   :  { %v667_v24 = vpack.c.bf16 %v543_v4, %v540_v44 }
 0x30d   :  { %2587 = vmatprep.subr.bf16.mxu1 %v667_v24 }
 0x30e   :  { %2588 = vmatpush3.bf16.msra.mxu1 %v667_v24 }
 0x30f   :  { %v2577_v47 = vpop.f32.mrb[4].mxu1  ;;  %2589 = vmatprep.subr.bf16.mxu1 %v668_v1 }
 0x310   :  { %v556_v22 = vpop.f32.mrb[5].mxu1 }
 0x311   :  { %v2578_v48 = vpop.f32.mrb[6].mxu1 }
 0x312   :  { %v670_v29 = vpack.c.bf16 %v2578_v48, %v2577_v47  ;;  %v559_v49 = vpop.f32.mrb[7].mxu1  ;;  %2590 = vmatpush3.bf16.msra.mxu1 %v668_v1 }
 0x313   :  { %v669_v50 = vpack.c.bf16 %v559_v49, %v556_v22  ;;  %v1171_v49 = vld [vmem:[%s3827_s4 + $0x38] sm:$0xff] }
 0x315   :  { %2591 = vmatprep.subr.bf16.mxu1 %v669_v50 }
 0x316   :  { %2592 = vmatpush3.bf16.msra.mxu1 %v669_v50 }
 0x317   :  { %v2581_v51 = vpop.f32.mrb[8].mxu1  ;;  %2593 = vmatprep.subr.bf16.mxu1 %v670_v29 }
 0x318   :  { %v572_v52 = vpop.f32.mrb[9].mxu1 }
 0x319   :  { %v2582_v53 = vpop.f32.mrb[10].mxu1 }
 0x31a   :  { %v672_v54 = vpack.c.bf16 %v2582_v53, %v2581_v51  ;;  %v575_v55 = vpop.f32.mrb[11].mxu1  ;;  %2594 = vmatpush3.bf16.msra.mxu1 %v670_v29  ;;  %v1170_v29 = vld [vmem:[%s3827_s4 + $0x30] sm:$0xff]  ;;  %v1168_v51 = vld [vmem:[%s3827_s4 + $0x20] sm:$0xff] }
 0x31b   :  { %v671_v56 = vpack.c.bf16 %v575_v55, %v572_v52  ;;  %v1169_v52 = vld [vmem:[%s3827_s4 + $0x28] sm:$0xff] }
 0x31d   :  { %2595 = vmatprep.subr.bf16.mxu1 %v671_v56 }
 0x31e   :  { %2596 = vmatpush3.bf16.msra.mxu1 %v671_v56 }
 0x31f   :  { %v2585_v57 = vpop.f32.mrb[12].mxu1  ;;  %2597 = vmatprep.subr.bf16.mxu1 %v672_v54 }
 0x320   :  { %v588_v59 = vpop.f32.mrb[13].mxu1 }
 0x321   :  { %v2586_v61 = vpop.f32.mrb[14].mxu1 }
 0x322   :  { %v674_v62 = vpack.c.bf16 %v2586_v61, %v2585_v57  ;;  %v591_v63 = vpop.f32.mrb[15].mxu1  ;;  %2598 = vmatpush3.bf16.msra.mxu1 %v672_v54 }
 0x323   :  { %v673_v0 = vpack.c.bf16 %v591_v63, %v588_v59 }
 0x325   :  { %2599 = vmatprep.subr.bf16.mxu1 %v673_v0 }
 0x326   :  { %2600 = vmatpush3.bf16.msra.mxu1 %v673_v0  ;;  %v1174_v0 = vld [vmem:[%s3827_s4 + $0x50] sm:$0xff] }
 0x327   :  { %2601 = vmatprep.subr.bf16.mxu1 %v674_v62 }
 0x32a   :  { %2602 = vmatpush3.bf16.msra.mxu1 %v674_v62 }
 0x32d   :  { %2604 = vmatmul.mubr.bf16.vlgmr.msra.gmra.mrb[16].mxu1 %v2714_v2  ;;  %v1175_v2 = vld [vmem:[%s3827_s4 + $0x58] sm:$0xff] }
 0x32e   :  { %2607 = vmatprep.mubr.bf16.mxu1 %v2715_v3 }
 0x335   :  { %2608 = vmatmul.mubr.bf16.gmra.mrb[20].mxu1 %v2716_v5  ;;  %v1172_v5 = vld [vmem:[%s3827_s4 + $0x40] sm:$0xff] }
 0x336   :  { %2611 = vmatprep.mubr.bf16.mxu1 %v2717_v6  ;;  %v1173_v6 = vld [vmem:[%s3827_s4 + $0x48] sm:$0xff] }
 0x33d   :  { %2612 = vmatmul.mubr.bf16.gmra.mrb[24].mxu1 %v2718_v7 }
 0x33e   :  { %2615 = vmatprep.mubr.bf16.mxu1 %v2719_v8 }
 0x345   :  { %2616 = vmatmul.mubr.bf16.gmra.mrb[28].mxu1 %v2720_v9 }
 0x346   :  { %2619 = vmatprep.mubr.bf16.mxu1 %v2721_v10 }
 0x34d   :  { %2620 = vmatmul.mubr.bf16.gmra.mrb[32].mxu1 %v2722_v11 }
 0x34e   :  { %2623 = vmatprep.mubr.bf16.mxu1 %v2723_v12 }
 0x355   :  { %2624 = vmatmul.mubr.bf16.gmra.mrb[36].mxu1 %v2724_v13 }
 0x356   :  { %2627 = vmatprep.mubr.bf16.mxu1 %v2725_v14 }
 0x35d   :  { %2628 = vmatmul.mubr.bf16.gmra.mrb[40].mxu1 %v2726_v15 }
 0x35e   :  { %2631 = vmatprep.mubr.bf16.mxu1 %v2727_v18  ;;  %v1178_v18 = vld [vmem:[%s3827_s4 + $0x70] sm:$0xff] }
 0x365   :  { %2632 = vmatmul.mubr.bf16.gmra.mrb[44].mxu1 %v2728_v21  ;;  %v1179_v21 = vld [vmem:[%s3827_s4 + $0x78] sm:$0xff] }
 0x366   :  { %2635 = vmatprep.mubr.bf16.mxu1 %v2729_v25 }
 0x36d   :  { %2636 = vmatmul.mubr.bf16.gmra.mrb[48].mxu1 %v2730_v26  ;;  %v1176_v26 = vld [vmem:[%s3827_s4 + $0x60] sm:$0xff] }
 0x36e   :  { %2639 = vmatprep.mubr.bf16.mxu1 %v2731_v28  ;;  %v1177_v28 = vld [vmem:[%s3827_s4 + $0x68] sm:$0xff] }
 0x375   :  { %2640 = vmatmul.mubr.bf16.gmra.mrb[52].mxu1 %v2732_v30 }
 0x376   :  { %2643 = vmatprep.mubr.bf16.mxu1 %v2733_v33 }
 0x37d   :  { %2644 = vmatmul.mubr.bf16.gmra.mrb[56].mxu1 %v2734_v35 }
 0x37e   :  { %2647 = vmatprep.mubr.bf16.mxu1 %v2735_v37 }
 0x385   :  { %2648 = vmatmul.mubr.bf16.gmra.mrb[60].mxu1 %v2736_v38 }
 0x386   :  { %2651 = vmatprep.mubr.bf16.mxu1 %v2737_v39 }
 0x38d   :  { %2652 = vmatmul.mubr.bf16.gmra.mrb[64].mxu1 %v2738_v40 }
 0x38e   :  { %2655 = vmatprep.mubr.bf16.mxu1 %v2739_v42 }
 0x395   :  { %2656 = vmatmul.mubr.bf16.gmra.mrb[68].mxu1 %v2740_v43 }
 0x396   :  { %2659 = vmatprep.mubr.bf16.mxu1 %v2741_v45  ;;  %v1182_v45 = vld [vmem:[%s3827_s4 + $0x90] sm:$0xff] }
 0x39d   :  { %2660 = vmatmul.mubr.bf16.gmra.mrb[72].mxu1 %v2742_v32  ;;  %v1183_v32 = vld [vmem:[%s3827_s4 + $0x98] sm:$0xff] }
 0x39e   :  { %2663 = vmatprep.mubr.bf16.mxu1 %v2743_v46 }
 0x3a5   :  { %2664 = vmatmul.mubr.bf16.gmra.mrb[76].mxu1 %v2744_v17  ;;  %v1180_v17 = vld [vmem:[%s3827_s4 + $0x80] sm:$0xff] }
 0x400   :  { %v2605_v16 = vpop.f32.mrb[16].mxu1 }
 0x401   :  { %v901_v41 = vpop.f32.mrb[17].mxu1  ;;  %v3226_v44 = vmul.f32 %v2605_v16, %v1166_v19 }
 0x402   :  { %v2606_v36 = vpop.f32.mrb[18].mxu1  ;;  %v3230_v4 = vmul.f32 %v1164_v60, %v901_v41 }
 0x403   :  { %v3228_v58 = vmul.f32 %v2606_v36, %v1167_v34  ;;  %v904_v1 = vpop.f32.mrb[19].mxu1 }
 0x404   :  { %v3232_v24 = vmul.f32 %v1165_v31, %v904_v1 }
 0x405   :  { %v1293_v47 = vpack.c.bf16 %v3228_v58, %v3226_v44  ;;  %v1189_v44 = vld [vmem:[%s3827_s4 + $0xc8] sm:$0xff] }
 0x406   :  { %v1292_v22 = vpack.c.bf16 %v3232_v24, %v3230_v4  ;;  %v1186_v24 = vld [vmem:[%s3827_s4 + $0xb0] sm:$0xff] }
 0x408   :  { %v2609_v48 = vpop.f32.mrb[20].mxu1 }
 0x409   :  { %v917_v50 = vpop.f32.mrb[21].mxu1  ;;  %v3250_v54 = vmul.f32 %v2609_v48, %v1170_v29  ;;  %v1187_v48 = vld [vmem:[%s3827_s4 + $0xb8] sm:$0xff] }
 0x40a   :  { %v2610_v53 = vpop.f32.mrb[22].mxu1  ;;  %v3254_v57 = vmul.f32 %v1168_v51, %v917_v50  ;;  %v1185_v50 = vld [vmem:[%s3827_s4 + $0xa8] sm:$0xff] }
 0x40b   :  { %v3252_v55 = vmul.f32 %v2610_v53, %v1171_v49  ;;  %v920_v56 = vpop.f32.mrb[23].mxu1  ;;  %v1184_v49 = vld [vmem:[%s3827_s4 + $0xa0] sm:$0xff] }
 0x40c   :  { %v3256_v59 = vmul.f32 %v1169_v52, %v920_v56 }
 0x40d   :  { %v1295_v61 = vpack.c.bf16 %v3252_v55, %v3250_v54  ;;  %v1193_v54 = vld [vmem:[%s3827_s4 + $0xe8] sm:$0xff] }
 0x40e   :  { %v1294_v62 = vpack.c.bf16 %v3256_v59, %v3254_v57  ;;  %v1194_v57 = vld [vmem:[%s3827_s4 + $0xf0] sm:$0xff]  ;;  %v1195_v59 = vld [vmem:[%s3827_s4 + $0xf8] sm:$0xff] }
 0x410   :  { %v2613_v63 = vpop.f32.mrb[24].mxu1 }
 0x411   :  { %v933_v3 = vpop.f32.mrb[25].mxu1  ;;  %v3274_v8 = vmul.f32 %v2613_v63, %v1174_v0 }
 0x412   :  { %v2614_v7 = vpop.f32.mrb[26].mxu1  ;;  %v3278_v11 = vmul.f32 %v1172_v5, %v933_v3 }
 0x413   :  { %v3276_v9 = vmul.f32 %v2614_v7, %v1175_v2  ;;  %v936_v10 = vpop.f32.mrb[27].mxu1 }
 0x414   :  { %v3280_v12 = vmul.f32 %v1173_v6, %v936_v10  ;;  %v1191_v6 = vld [vmem:[%s3827_s4 + $0xd8] sm:$0xff]  ;;  %v1188_v10 = vld [vmem:[%s3827_s4 + $0xc0] sm:$0xff] }
 0x415   :  { %v1297_v13 = vpack.c.bf16 %v3276_v9, %v3274_v8  ;;  %v1197_v8 = vld [vmem:[%s3827_s4 + $0x108] sm:$0xff] }
 0x416   :  { %v1296_v14 = vpack.c.bf16 %v3280_v12, %v3278_v11  ;;  %v1198_v11 = vld [vmem:[%s3827_s4 + $0x110] sm:$0xff]  ;;  %v1199_v12 = vld [vmem:[%s3827_s4 + $0x118] sm:$0xff] }
 0x418   :  { %v2617_v15 = vpop.f32.mrb[28].mxu1 }
 0x419   :  { %v949_v25 = vpop.f32.mrb[29].mxu1  ;;  %v3298_v33 = vmul.f32 %v2617_v15, %v1178_v18 }
 0x41a   :  { %v2618_v30 = vpop.f32.mrb[30].mxu1  ;;  %v3302_v38 = vmul.f32 %v1176_v26, %v949_v25 }
 0x41b   :  { %v3300_v35 = vmul.f32 %v2618_v30, %v1179_v21  ;;  %v952_v37 = vpop.f32.mrb[31].mxu1 }
 0x41c   :  { %v3304_v39 = vmul.f32 %v1177_v28, %v952_v37  ;;  %v1192_v37 = vld [vmem:[%s3827_s4 + $0xe0] sm:$0xff] }
 0x41d   :  { %v1299_v40 = vpack.c.bf16 %v3300_v35, %v3298_v33  ;;  %v1200_v33 = vld [vmem:[%s3827_s4 + $0x120] sm:$0xff]  ;;  %v1201_v35 = vld [vmem:[%s3827_s4 + $0x128] sm:$0xff] }
 0x41e   :  { %v1298_v42 = vpack.c.bf16 %v3304_v39, %v3302_v38  ;;  %v2745_v38 = vld [vmem:[%s3826_s5] ss:$16 sps:$4 sm:$0xff]  }
 0x420   :  { %v2621_v43 = vpop.f32.mrb[32].mxu1 }
 0x421   :  { %v965_v46 = vpop.f32.mrb[33].mxu1  ;;  %v1246_v19 = vmul.f32 %v2621_v43, %v1182_v45 }
 0x422   :  { %v2622_v16 = vpop.f32.mrb[34].mxu1  ;;  %v1244_v60 = vmul.f32 %v1180_v17, %v965_v46 }
 0x423   :  { %v1247_v34 = vmul.f32 %v2622_v16, %v1183_v32  ;;  %v968_v41 = vpop.f32.mrb[35].mxu1 }
 0x424   :  { %v1245_v31 = vmul.f32 %v1181_v20, %v968_v41 }
 0x425   :  { %v1301_v36 = vpack.c.bf16 %v1247_v34, %v1246_v19  ;;  %v1196_v19 = vld [vmem:[%s3827_s4 + $0x100] sm:$0xff] }
 0x426   :  { %v1300_v1 = vpack.c.bf16 %v1245_v31, %v1244_v60 }
 0x428   :  { %v2625_v4 = vpop.f32.mrb[36].mxu1  ;;  %2449 = vmatprep.subr.bf16.mxu0 %v1300_v1 }
 0x429   :  { %v981_v29 = vpop.f32.mrb[37].mxu1  ;;  %2450 = vmatpush3.bf16.msra.mxu0 %v1292_v22  ;;  %v1250_v52 = vmul.f32 %v2625_v4, %v1186_v24  ;;  %v1190_v22 = vld [vmem:[%s3827_s4 + $0xd0] sm:$0xff]  ;;  %v1203_v24 = vld [vmem:[%s3827_s4 + $0x138] sm:$0xff] }
 0x42a   :  { %v2626_v51 = vpop.f32.mrb[38].mxu1  ;;  %2451 = vmatprep.subr.bf16.mxu0 %v1301_v36  ;;  %v1248_v63 = vmul.f32 %v1184_v49, %v981_v29  ;;  %v1202_v4 = vld [vmem:[%s3827_s4 + $0x130] sm:$0xff] }
 0x42b   :  { %v1251_v53 = vmul.f32 %v2626_v51, %v1187_v48  ;;  %v984_v56 = vpop.f32.mrb[39].mxu1 }
 0x42c   :  { %v1249_v0 = vmul.f32 %v1185_v50, %v984_v56 }
 0x42d   :  { %v1303_v2 = vpack.c.bf16 %v1251_v53, %v1250_v52  ;;  %2452 = vmatpush3.bf16.msra.mxu0 %v1293_v47  ;;  %v2750_v53 = vld [vmem:[%s3826_s5 + $0x20] ss:$16 sps:$4 sm:$0xff]  }
 0x42e   :  { %v1302_v3 = vpack.c.bf16 %v1249_v0, %v1248_v63  ;;  %v2753_v63 = vld [vmem:[%s3826_s5 + $0xc] ss:$16 sps:$4 sm:$0xff]  }
 0x430   :  { %v2629_v5 = vpop.f32.mrb[40].mxu1  ;;  %2453 = vmatprep.subr.bf16.mxu0 %v1302_v3  ;;  %v1206_v3 = vld [vmem:[%s3827_s4 + $0x150] sm:$0xff] }
 0x431   :  { %v997_v7 = vpop.f32.mrb[41].mxu1  ;;  %2454 = vmatpush3.bf16.msra.mxu0 %v1294_v62  ;;  %v1254_v47 = vmul.f32 %v2629_v5, %v1190_v22  ;;  %v1207_v5 = vld [vmem:[%s3827_s4 + $0x158] sm:$0xff] }
 0x432   :  { %v2630_v58 = vpop.f32.mrb[42].mxu1  ;;  %2455 = vmatprep.subr.bf16.mxu0 %v1303_v2  ;;  %v1252_v21 = vmul.f32 %v1188_v10, %v997_v7  ;;  %v1205_v7 = vld [vmem:[%s3827_s4 + $0x148] sm:$0xff] }
 0x433   :  { %v1255_v15 = vmul.f32 %v2630_v58, %v1191_v6  ;;  %v1000_v18 = vpop.f32.mrb[43].mxu1  ;;  %v1204_v6 = vld [vmem:[%s3827_s4 + $0x140] sm:$0xff] }
 0x434   :  { %v1253_v25 = vmul.f32 %v1189_v44, %v1000_v18 }
 0x435   :  { %v1305_v26 = vpack.c.bf16 %v1255_v15, %v1254_v47  ;;  %2456 = vmatpush3.bf16.msra.mxu0 %v1295_v61 }
 0x436   :  { %v1304_v28 = vpack.c.bf16 %v1253_v25, %v1252_v21 }
 0x438   :  { %v2633_v30 = vpop.f32.mrb[44].mxu1  ;;  %2457 = vmatprep.subr.bf16.mxu0 %v1304_v28  ;;  %v1210_v28 = vld [vmem:[%s3827_s4 + $0x170] sm:$0xff] }
 0x439   :  { %v1013_v62 = vpop.f32.mrb[45].mxu1  ;;  %2458 = vmatpush3.bf16.msra.mxu0 %v1296_v14  ;;  %v1258_v61 = vmul.f32 %v2633_v30, %v1194_v57  ;;  %v1211_v30 = vld [vmem:[%s3827_s4 + $0x178] sm:$0xff] }
 0x43a   :  { %v2634_v55 = vpop.f32.mrb[46].mxu1  ;;  %2459 = vmatprep.subr.bf16.mxu0 %v1305_v26  ;;  %v1256_v32 = vmul.f32 %v1192_v37, %v1013_v62  ;;  %v1209_v62 = vld [vmem:[%s3827_s4 + $0x168] sm:$0xff] }
 0x43b   :  { %v1259_v43 = vmul.f32 %v2634_v55, %v1195_v59  ;;  %v1016_v45 = vpop.f32.mrb[47].mxu1  ;;  %v1208_v59 = vld [vmem:[%s3827_s4 + $0x160] sm:$0xff] }
 0x43c   :  { %v1257_v46 = vmul.f32 %v1193_v54, %v1016_v45 }
 0x43d   :  { %v1307_v17 = vpack.c.bf16 %v1259_v43, %v1258_v61  ;;  %2460 = vmatpush3.bf16.msra.mxu0 %v1297_v13 }
 0x43e   :  { %v1306_v20 = vpack.c.bf16 %v1257_v46, %v1256_v32 }
 0x440   :  { %v2637_v16 = vpop.f32.mrb[48].mxu1  ;;  %2461 = vmatprep.subr.bf16.mxu0 %v1306_v20  ;;  %v1214_v20 = vld [vmem:[%s3827_s4 + $0x190] sm:$0xff] }
 0x441   :  { %v1029_v14 = vpop.f32.mrb[49].mxu1  ;;  %2462 = vmatpush3.bf16.msra.mxu0 %v1298_v42  ;;  %v3388_v13 = vmul.f32 %v2637_v16, %v1198_v11  ;;  %v2748_v42 = vld [vmem:[%s3826_s5 + $0x24] ss:$16 sps:$4 sm:$0xff]   ;;  %v1215_v16 = vld [vmem:[%s3827_s4 + $0x198] sm:$0xff] }
 0x442   :  { %v2638_v9 = vpop.f32.mrb[50].mxu1  ;;  %2463 = vmatprep.subr.bf16.mxu0 %v1307_v17  ;;  %v3392_v60 = vmul.f32 %v1196_v19, %v1029_v14  ;;  %v1213_v14 = vld [vmem:[%s3827_s4 + $0x188] sm:$0xff] }
 0x443   :  { %v3390_v34 = vmul.f32 %v2638_v9, %v1199_v12  ;;  %v1032_v41 = vpop.f32.mrb[51].mxu1  ;;  %v1212_v12 = vld [vmem:[%s3827_s4 + $0x180] sm:$0xff] }
 0x444   :  { %v3394_v31 = vmul.f32 %v1197_v8, %v1032_v41 }
 0x445   :  { %v1309_v39 = vpack.c.bf16 %v3390_v34, %v3388_v13  ;;  %2464 = vmatpush3.bf16.msra.mxu0 %v1299_v40  ;;  %v1221_v13 = vld [vmem:[%s3827_s4 + $0x1c8] sm:$0xff] }
 0x446   :  { %v1308_v36 = vpack.c.bf16 %v3394_v31, %v3392_v60  ;;  %v1222_v60 = vld [vmem:[%s3827_s4 + $0x1d0] sm:$0xff]  ;;  %v1223_v31 = vld [vmem:[%s3827_s4 + $0x1d8] sm:$0xff] }
 0x448   :  { %v2641_v1 = vpop.f32.mrb[52].mxu1  ;;  %1397 = vmatmul.mubr.bf16.vlgmr.msra.gmra.mrb[16].mxu0 %v2745_v38 }
 0x449   :  { %v1045_v48 = vpop.f32.mrb[53].mxu1  ;;  %1404 = vmatprep.mubr.bf16.mxu0 %v2748_v42  ;;  %v3421_v29 = vmul.f32 %v2641_v1, %v1202_v4 }
 0x44a   :  { %v2642_v40 = vpop.f32.mrb[54].mxu1  ;;  %v3425_v51 = vmul.f32 %v1200_v33, %v1045_v48  ;;  %v1218_v48 = vld [vmem:[%s3827_s4 + $0x1b0] sm:$0xff]  ;;  %v1219_v33 = vld [vmem:[%s3827_s4 + $0x1b8] sm:$0xff] }
 0x44b   :  { %v3423_v49 = vmul.f32 %v2642_v40, %v1203_v24  ;;  %v1048_v50 = vpop.f32.mrb[55].mxu1  ;;  %v1216_v40 = vld [vmem:[%s3827_s4 + $0x1a0] sm:$0xff] }
 0x44c   :  { %v3427_v52 = vmul.f32 %v1201_v35, %v1048_v50  ;;  %v1217_v50 = vld [vmem:[%s3827_s4 + $0x1a8] sm:$0xff] }
 0x44d   :  { %v1311_v56 = vpack.c.bf16 %v3423_v49, %v3421_v29  ;;  %v1225_v29 = vld [vmem:[%s3827_s4 + $0x1e8] sm:$0xff] }
 0x44e   :  { %v1310_v0 = vpack.c.bf16 %v3427_v52, %v3425_v51  ;;  %v1226_v51 = vld [vmem:[%s3827_s4 + $0x1f0] sm:$0xff]  ;;  %v1227_v52 = vld [vmem:[%s3827_s4 + $0x1f8] sm:$0xff] }
 0x450   :  { %v2645_v2 = vpop.f32.mrb[56].mxu1  ;;  %1405 = vmatmul.mubr.bf16.gmra.mrb[20].mxu0 %v2750_v53 }
 0x451   :  { %v1061_v22 = vpop.f32.mrb[57].mxu1  ;;  %1445 = vmatprep.mubr.bf16.mxu0 %v2753_v63  ;;  %v3451_v44 = vmul.f32 %v2645_v2, %v1206_v3 }
 0x452   :  { %v2646_v10 = vpop.f32.mrb[58].mxu1  ;;  %v3455_v15 = vmul.f32 %v1204_v6, %v1061_v22 }
 0x453   :  { %v3453_v58 = vmul.f32 %v2646_v10, %v1207_v5  ;;  %v1064_v47 = vpop.f32.mrb[59].mxu1 }
 0x454   :  { %v3457_v18 = vmul.f32 %v1205_v7, %v1064_v47  ;;  %v1220_v47 = vld [vmem:[%s3827_s4 + $0x1c0] sm:$0xff] }
 0x455   :  { %v1313_v21 = vpack.c.bf16 %v3453_v58, %v3451_v44  ;;  %v2754_v44 = vld [vmem:[%s3826_s5 + $0x2c] ss:$16 sps:$4 sm:$0xff]   ;;  %v2756_v58 = vld [vmem:[%s3826_s5 + $0x28] ss:$16 sps:$4 sm:$0xff]  }
 0x456   :  { %v1312_v25 = vpack.c.bf16 %v3457_v18, %v3455_v15  ;;  %v2751_v15 = vld [vmem:[%s3826_s5 + $0x8] ss:$16 sps:$4 sm:$0xff]   ;;  %v2757_v18 = vld [vmem:[%s3828_s6] sm:$0xff]  }
 0x458   :  { %v2649_v26 = vpop.f32.mrb[60].mxu1 }
 0x459   :  { %v1077_v57 = vpop.f32.mrb[61].mxu1  ;;  %v3475_v54 = vmul.f32 %v2649_v26, %v1210_v28 }
 0x45a   :  { %v2650_v37 = vpop.f32.mrb[62].mxu1  ;;  %v3479_v43 = vmul.f32 %v1208_v59, %v1077_v57 }
 0x45b   :  { %v3477_v55 = vmul.f32 %v2650_v37, %v1211_v30  ;;  %v1080_v61 = vpop.f32.mrb[63].mxu1 }
 0x45c   :  { %v3481_v45 = vmul.f32 %v1209_v62, %v1080_v61  ;;  %v1224_v61 = vld [vmem:[%s3827_s4 + $0x1e0] sm:$0xff] }
 0x45d   :  { %v1315_v32 = vpack.c.bf16 %v3477_v55, %v3475_v54  ;;  %v2760_v54 = vld [vmem:[%s3828_s6 + $0x18] sm:$0xff]   ;;  %v2761_v55 = vld [vmem:[%s3828_s6 + $0x20] sm:$0xff]  }
 0x45e   :  { %v1314_v46 = vpack.c.bf16 %v3481_v45, %v3479_v43  ;;  %v2762_v43 = vld [vmem:[%s3828_s6 + $0x28] sm:$0xff]   ;;  %v2763_v45 = vld [vmem:[%s3828_s6 + $0x30] sm:$0xff]  }
 0x460   :  { %v2653_v17 = vpop.f32.mrb[64].mxu1 }
 0x461   :  { %v1093_v11 = vpop.f32.mrb[65].mxu1  ;;  %v1278_v8 = vmul.f32 %v2653_v17, %v1214_v20 }
 0x462   :  { %v2654_v19 = vpop.f32.mrb[66].mxu1  ;;  %v1276_v38 = vmul.f32 %v1212_v12, %v1093_v11 }
 0x463   :  { %v1279_v9 = vmul.f32 %v2654_v19, %v1215_v16  ;;  %v1096_v41 = vpop.f32.mrb[67].mxu1 }
 0x464   :  { %v1277_v42 = vmul.f32 %v1213_v14, %v1096_v41 }
 0x465   :  { %v1317_v1 = vpack.c.bf16 %v1279_v9, %v1278_v8 }
 0x466   :  { %v1316_v4 = vpack.c.bf16 %v1277_v42, %v1276_v38 }
 0x468   :  { %v2657_v24 = vpop.f32.mrb[68].mxu1  ;;  %2477 = vmatprep.subr.bf16.mxu0 %v1316_v4 }
 0x469   :  { %v1109_v35 = vpop.f32.mrb[69].mxu1  ;;  %2478 = vmatpush3.bf16.msra.mxu0 %v1308_v36  ;;  %v1282_v63 = vmul.f32 %v2657_v24, %v1218_v48 }
 0x46a   :  { %v2658_v53 = vpop.f32.mrb[70].mxu1  ;;  %2479 = vmatprep.subr.bf16.mxu0 %v1317_v1  ;;  %v1280_v5 = vmul.f32 %v1216_v40, %v1109_v35 }
 0x46b   :  { %v1283_v2 = vmul.f32 %v2658_v53, %v1219_v33  ;;  %v1112_v3 = vpop.f32.mrb[71].mxu1 }
 0x46c   :  { %v1281_v22 = vmul.f32 %v1217_v50, %v1112_v3 }
 0x46d   :  { %v1319_v6 = vpack.c.bf16 %v1283_v2, %v1282_v63  ;;  %2480 = vmatpush3.bf16.msra.mxu0 %v1309_v39 }
 0x46e   :  { %v1318_v7 = vpack.c.bf16 %v1281_v22, %v1280_v5 }
 0x470   :  { %v2661_v10 = vpop.f32.mrb[72].mxu1  ;;  %2481 = vmatprep.subr.bf16.mxu0 %v1318_v7 }
 0x471   :  { %v1125_v36 = vpop.f32.mrb[73].mxu1  ;;  %2482 = vmatpush3.bf16.msra.mxu0 %v1310_v0  ;;  %v1286_v39 = vmul.f32 %v2661_v10, %v1222_v60 }
 0x472   :  { %v2662_v34 = vpop.f32.mrb[74].mxu1  ;;  %2483 = vmatprep.subr.bf16.mxu0 %v1319_v6  ;;  %v1284_v30 = vmul.f32 %v1220_v47, %v1125_v36 }
 0x473   :  { %v1287_v26 = vmul.f32 %v2662_v34, %v1223_v31  ;;  %v1128_v28 = vpop.f32.mrb[75].mxu1 }
 0x474   :  { %v1285_v57 = vmul.f32 %v1221_v13, %v1128_v28 }
 0x475   :  { %v1321_v59 = vpack.c.bf16 %v1287_v26, %v1286_v39  ;;  %2484 = vmatpush3.bf16.msra.mxu0 %v1311_v56 }
 0x476   :  { %v1320_v62 = vpack.c.bf16 %v1285_v57, %v1284_v30 }
 0x478   :  { %v2665_v37 = vpop.f32.mrb[76].mxu1  ;;  %2485 = vmatprep.subr.bf16.mxu0 %v1320_v62 }
 0x479   :  { %v1141_v0 = vpop.f32.mrb[77].mxu1  ;;  %2486 = vmatpush3.bf16.msra.mxu0 %v1312_v25  ;;  %v1290_v56 = vmul.f32 %v2665_v37, %v1226_v51  ;;  %v2759_v25 = vld [vmem:[%s3828_s6 + $0x10] sm:$0xff]  }
 0x47a   :  { %v2666_v49 = vpop.f32.mrb[78].mxu1  ;;  %2487 = vmatprep.subr.bf16.mxu0 %v1321_v59  ;;  %v1288_v16 = vmul.f32 %v1224_v61, %v1141_v0 }
 0x47b   :  { %v1291_v17 = vmul.f32 %v2666_v49, %v1227_v52  ;;  %v1144_v20 = vpop.f32.mrb[79].mxu1 }
 0x47c   :  { %v1289_v11 = vmul.f32 %v1225_v29, %v1144_v20 }
 0x47d   :  { %v1323_v12 = vpack.c.bf16 %v1291_v17, %v1290_v56  ;;  %2488 = vmatpush3.bf16.msra.mxu0 %v1313_v21  ;;  %v2758_v21 = vld [vmem:[%s3828_s6 + $0x8] sm:$0xff]  }
 0x47e   :  { %v1322_v14 = vpack.c.bf16 %v1289_v11, %v1288_v16 }
 0x480   :  { %2489 = vmatprep.subr.bf16.mxu0 %v1322_v14 }
 0x481   :  { %2490 = vmatpush3.bf16.msra.mxu0 %v1314_v46 }
 0x482   :  { %2491 = vmatprep.subr.bf16.mxu0 %v1323_v12 }
 0x485   :  { %2492 = vmatpush3.bf16.msra.mxu0 %v1315_v32  ;;  %v2764_v32 = vld [vmem:[%s3828_s6 + $0x38] sm:$0xff]   ;;  %s2844_s6 = smov 16  }
 0x486   :  { %2667 = vmatprep.subr.bf16.mxu0 %v2757_v18 }
 0x488   :  { %1446 = vmatmul.mubr.bf16.vlgmr.msra.gmra.mrb[24].mxu0 %v2751_v15 }
 0x489   :  { %1453 = vmatprep.mubr.bf16.mxu0 %v2754_v44  ;;  %2668 = vmatpush3.bf16.msra.mxu0 %v2757_v18 }
 0x48a   :  { %2669 = vmatprep.subr.bf16.mxu0 %v2758_v21 }
 0x48d   :  { %2670 = vmatpush3.bf16.msra.mxu0 %v2758_v21 }
 0x48e   :  { %2671 = vmatprep.subr.bf16.mxu0 %v2759_v25 }
 0x490   :  { %1454 = vmatmul.mubr.bf16.gmra.mrb[28].mxu0 %v2756_v58 }
 0x491   :  { %2672 = vmatpush3.bf16.msra.mxu0 %v2759_v25 }
 0x492   :  { %2673 = vmatprep.subr.bf16.mxu0 %v2760_v54 }
 0x495   :  { %2674 = vmatpush3.bf16.msra.mxu0 %v2760_v54 }
 0x496   :  { %2675 = vmatprep.subr.bf16.mxu0 %v2761_v55 }
 0x499   :  { %2676 = vmatpush3.bf16.msra.mxu0 %v2761_v55 }
 0x49a   :  { %2677 = vmatprep.subr.bf16.mxu0 %v2762_v43 }
 0x49d   :  { %2678 = vmatpush3.bf16.msra.mxu0 %v2762_v43 }
 0x49e   :  { %2679 = vmatprep.subr.bf16.mxu0 %v2763_v45 }
 0x4a1   :  { %2680 = vmatpush3.bf16.msra.mxu0 %v2763_v45 }
 0x4a2   :  { %2681 = vmatprep.subr.bf16.mxu0 %v2764_v32 }
 0x4a5   :  { %2682 = vmatpush3.bf16.msra.mxu0 %v2764_v32 }
 0x51b   :  { %v2465_v46 = vpop.f32.mrb[16].mxu0 }
 0x51c   :  { %v2466_v19 = vpop.f32.mrb[17].mxu0 }
 0x51d   :  { %v2467_v8 = vadd.f32 %v2466_v19, %v2465_v46  ;;  %v2468_v9 = vpop.f32.mrb[18].mxu0 }
 0x51e   :  { %v2469_v41 = vpop.f32.mrb[19].mxu0 }
 0x51f   :  { %v2470_v38 = vadd.f32 %v2469_v41, %v2468_v9 }
 0x523   :  { %v2471_v42 = vpop.f32.mrb[20].mxu0 }
 0x524   :  { %v2472_v1 = vpop.f32.mrb[21].mxu0 }
 0x525   :  { %v2473_v4 = vadd.f32 %v2472_v1, %v2471_v42  ;;  %v2474_v24 = vpop.f32.mrb[22].mxu0 }
 0x526   :  { %v2475_v48 = vpop.f32.mrb[23].mxu0 }
 0x527   :  { %v2476_v33 = vadd.f32 %v2475_v48, %v2474_v24 }
 0x55b   :  { %v2493_v35 = vpop.f32.mrb[24].mxu0 }
 0x55c   :  { %v2494_v40 = vpop.f32.mrb[25].mxu0 }
 0x55d   :  { %v2495_v50 = vadd.f32 %v2494_v40, %v2493_v35  ;;  %v2496_v53 = vpop.f32.mrb[26].mxu0  ;;  %v3625_v35 = vld [vmem:[%s3823_s12] sm:$0x1] }
 0x55e   :  { %v2497_v63 = vpop.f32.mrb[27].mxu0 }
 0x55f   :  { %v1448_v2 = vadd.f32 %v2495_v50, %v2467_v8  ;;  %v2498_v3 = vadd.f32 %v2497_v63, %v2496_v53 }
 0x561   :  { %v1451_v5 = vadd.f32 %v2498_v3, %v2470_v38 }
 0x563   :  { %v2499_v22 = vpop.f32.mrb[28].mxu0  ;;  %v1462_v6 = vpack.c.bf16 %v1451_v5, %v1448_v2  ;;  %v2765_v5 = vld [vmem:[%s3829_s7] ss:$8 sps:$4 sm:$0xff]  }
 0x564   :  { %v2500_v7 = vpop.f32.mrb[29].mxu0 }
 0x565   :  { %v2501_v10 = vadd.f32 %v2500_v7, %v2499_v22  ;;  %v2502_v60 = vpop.f32.mrb[30].mxu0  ;;  %2683 = vmatprep.mubr.bf16.mxu0 %v1462_v6  ;;  %v2847_v22 = vmov 0   ;;  %v2767_v7 = vld [vmem:[%s3829_s7 + $0x4] ss:$8 sps:$4 sm:$0xff]  }
 0x566   :  { %v2503_v31 = vpop.f32.mrb[31].mxu0  ;;  %1707 = vmatprep.subr.bf16.mxu0 %v2767_v7 }
 0x567   :  { %v1456_v36 = vadd.f32 %v2501_v10, %v2473_v4  ;;  %v2504_v47 = vadd.f32 %v2503_v31, %v2502_v60 }
 0x569   :  { %v1459_v13 = vadd.f32 %v2504_v47, %v2476_v33 }
 0x56b   :  { %v1463_v34 = vpack.c.bf16 %v1459_v13, %v1456_v36 }
 0x56d   :  { %2684 = vmatmul.mubr.bf16.vlgmr.msra.gmra.mrb[32].mxu0 %v1463_v34 }
 0x56e   :  { %1739 = vmatprep.mubr.bf16.mxu0 %v2847_v22  ;;  %1708 = vmatpush1.bf16.msra.mxu0 %v2765_v5 }
 0x640   :  { %v3592_v39 = vpop.f32.mrb[32].mxu0 }
 0x641   :  { %v3594_v26 = vpop.f32.mrb[33].mxu0  ;;  %v1595_v59 = vmul.f32 %v3592_v39, %v3592_v39  ;;  %v1581_v0 = vsel %vm1577_vm2, %v3592_v39, 0.0 }
 0x642   :  { %v1593_v28 = vmul.f32 %v3594_v26, %v3594_v26  ;;  %v3598_v30 = vpop.f32.mrb[34].mxu0  ;;  %v1578_v62 = vsel %vm1577_vm2, %v3594_v26, 0.0 }
 0x643   :  { %v3600_v57 = vpop.f32.mrb[35].mxu0  ;;  %v1596_v29 = vmul.f32 %v3598_v30, %v3598_v30  ;;  %v1600_v20 = vsel %vm1577_vm2, %v1595_v59, 0.0  ;;  %v1583_v16 = vsel %vm1577_vm2, %v3598_v30, 0.0 }
 0x644   :  { %v1579_v37 = vsel %vm1577_vm2, %v3600_v57, 0.0  ;;  %v1594_v51 = vmul.f32 %v3600_v57, %v3600_v57  ;;  %v1597_v61 = vsel %vm1577_vm2, %v1593_v28, 0.0 }
 0x645   :  { %v1580_v52 = vadd.f32 %v1579_v37, %v1578_v62  ;;  %v1602_v14 = vsel %vm1577_vm2, %v1596_v29, 0.0 }
 0x646   :  { %v1598_v49 = vsel %vm1577_vm2, %v1594_v51, 0.0 }
 0x647   :  { %v1582_v56 = vadd.f32 %v1581_v0, %v1580_v52  ;;  %v1599_v17 = vadd.f32 %v1598_v49, %v1597_v61 }
 0x649   :  { %v1584_v11 = vadd.f32 %v1583_v16, %v1582_v56  ;;  %v1601_v12 = vadd.f32 %v1600_v20, %v1599_v17  ;;  %v2771_v20 = vld [vmem:[%s3830_s10 + $0x10] ss:$8 sps:$4 sm:$0xff]   ;;  %v2776_v16 = vld [vmem:[%s3830_s10 + $0x24] ss:$8 sps:$4 sm:$0xff]  }
 0x64b   :  { %v1585_v15 = vrot.slane %v1584_v11, 4  ;;  %v1603_v44 = vadd.f32 %v1602_v14, %v1601_v12  ;;  %v2779_v12 = vld [vmem:[%s3830_s10 + $0x34] ss:$8 sps:$4 sm:$0xff]   ;;  %v2777_v14 = vld [vmem:[%s3830_s10 + $0x30] ss:$8 sps:$4 sm:$0xff]  }
 0x64d   :  { %v1586_v58 = vadd.f32 %v1585_v15, %v1584_v11  ;;  %v1604_v18 = vrot.slane %v1603_v44, 4  ;;  %v2774_v11 = vld [vmem:[%s3830_s10 + $0x20] ss:$8 sps:$4 sm:$0xff]   ;;  %v2782_v15 = vld [vmem:[%s3830_s10 + $0x44] ss:$8 sps:$4 sm:$0xff]  }
 0x64f   :  { %v1587_v21 = vrot.slane %v1586_v58, 2  ;;  %v1605_v25 = vadd.f32 %v1604_v18, %v1603_v44  ;;  %v2780_v44 = vld [vmem:[%s3830_s10 + $0x40] ss:$8 sps:$4 sm:$0xff]   ;;  %v2783_v18 = vld [vmem:[%s3830_s10 + $0x50] ss:$8 sps:$4 sm:$0xff]  }
 0x651   :  { %v1588_v54 = vadd.f32 %v1587_v21, %v1586_v58  ;;  %v1606_v55 = vrot.slane %v1605_v25, 2  ;;  %v2785_v58 = vld [vmem:[%s3830_s10 + $0x54] ss:$8 sps:$4 sm:$0xff]   ;;  %v2788_v21 = vld [vmem:[%s3830_s10 + $0x64] ss:$8 sps:$4 sm:$0xff]  }
 0x653   :  { %v1589_v43 = vrot.slane %v1588_v54, 1  ;;  %v1607_v45 = vadd.f32 %v1606_v55, %v1605_v25  ;;  %v2786_v25 = vld [vmem:[%s3830_s10 + $0x60] ss:$8 sps:$4 sm:$0xff]   ;;  %v2789_v55 = vld [vmem:[%s3830_s10 + $0x70] ss:$8 sps:$4 sm:$0xff]  }
 0x655   :  { %v1590_v32 = vadd.f32 %v1589_v43, %v1588_v54  ;;  %v1608_v46 = vrot.slane %v1607_v45, 1  ;;  %v2791_v54 = vld [vmem:[%s3830_s10 + $0x74] ss:$8 sps:$4 sm:$0xff]   ;;  %v2794_v43 = vld [vmem:[%s3830_s10 + $0x84] ss:$8 sps:$4 sm:$0xff]  }
 0x657   :  { %v1592_v19 = vmul.f32 0.03125, %v1590_v32  ;;  %v1609_v8 = vadd.f32 %v1608_v46, %v1607_v45  ;;  %v2792_v45 = vld [vmem:[%s3830_s10 + $0x80] ss:$8 sps:$4 sm:$0xff]   ;;  %v2797_v32 = vld [vmem:[%s3830_s10 + $0x94] ss:$8 sps:$4 sm:$0xff]  }
 0x658   :  { %v2795_v46 = vld [vmem:[%s3830_s10 + $0x90] ss:$8 sps:$4 sm:$0xff]  }
 0x659   :  { %v1610_v9 = vmul.f32 0.03125, %v1609_v8  ;;  %v1611_v41 = vmul.f32 %v1592_v19, %v1592_v19  ;;  %v2798_v8 = vld [vmem:[%s3830_s10 + $0xa0] ss:$8 sps:$4 sm:$0xff]  }
 0x65b   :  { %v1612_v38 = vsub.f32 %v1610_v9, %v1611_v41  ;;  %v2803_v9 = vld [vmem:[%s3830_s10 + $0xb4] ss:$8 sps:$4 sm:$0xff]   ;;  %v2801_v41 = vld [vmem:[%s3830_s10 + $0xb0] ss:$8 sps:$4 sm:$0xff]  }
 0x65d   :  { %v1613_v42 = vmax.f32 %v1612_v38, 0.0  ;;  %v2806_v38 = vld [vmem:[%s3830_s10 + $0xc4] ss:$8 sps:$4 sm:$0xff]  }
 0x65f   :  { %v1614_v1 = vadd.f32 1e-05, %v1613_v42  ;;  %v2804_v42 = vld [vmem:[%s3830_s10 + $0xc0] ss:$8 sps:$4 sm:$0xff]  }
 0x661   :  { %2834 = vrsqrt.f32 %v1614_v1  ;;  %v2809_v1 = vld [vmem:[%s3830_s10 + $0xd4] ss:$8 sps:$4 sm:$0xff]  }
 0x66b   :  { %v2835_v4 = vpop.eup %2834 }
 0x66c   :  { %v1623_v24 = vrot.slane %v2835_v4, %v3080_v27  ;;  %v2807_v4 = vld [vmem:[%s3830_s10 + $0xd0] ss:$8 sps:$4 sm:$0xff]  }
 0x66e   :  { %v1630_v48 = vrot.slane %v1623_v24, %v3080_v27  ;;  %v2812_v24 = vld [vmem:[%s3830_s10 + $0xe4] ss:$8 sps:$4 sm:$0xff]  }
 0x670   :  { %1631 = vrot.lane.b32.xlu1 %v1630_v48, %s2844_s6  ;;  %v2810_v48 = vld [vmem:[%s3830_s10 + $0xe0] ss:$8 sps:$4 sm:$0xff]  }
 0x6e2   :  { %v1632_v33 = vpop.permute.xlu1 %1631 }
 0x6e3   :  { %v1634_v40 = vmul.f32 %v3625_v35, %v1632_v33 }
 0x6e5   :  { %v1639_v50 = vrot.slane %v1634_v40, %v3078_v23  ;;  %v1761_v40 = vld [vmem:[%s3831_s8] sm:$0xff] }
 0x6e7   :  { %1640 = vrot.lane.b32.xlu1 %v1639_v50, %s2845_s22  ;;  %v1763_v50 = vld [vmem:[%s3831_s8 + $0x10] sm:$0xff] }
 0x759   :  { %v1641_v53 = vpop.permute.xlu1 %1640 }
 0x75a   :  { %v1647_v63 = vmul.f32 %v1641_v53, %v1592_v19  ;;  %v1646_v31 = vmul.f32 %v3598_v30, %v1641_v53  ;;  %v1643_v36 = vmul.f32 %v1641_v53, %v3594_v26  ;;  %v1644_v47 = vmul.f32 %v1641_v53, %v3600_v57  ;;  %v2768_v26 = vld [vmem:[%s3830_s10] ss:$8 sps:$4 sm:$0xff]   ;;  %v2770_v30 = vld [vmem:[%s3830_s10 + $0x4] ss:$8 sps:$4 sm:$0xff]   ;;  %v2773_v57 = vld [vmem:[%s3830_s10 + $0x14] ss:$8 sps:$4 sm:$0xff]  }
 0x75b   :  { %2020 = vmatprep.subr.bf16.mxu1 %v2770_v30  ;;  %v2800_v19 = vld [vmem:[%s3830_s10 + $0xa4] ss:$8 sps:$4 sm:$0xff]  }
 0x75c   :  { %v1655_v2 = vrot.slane %v1647_v63, %v3080_v27  ;;  %2021 = vmatpush1.bf16.msra.mxu1 %v2768_v26  ;;  %v1762_v63 = vld [vmem:[%s3831_s8 + $0x8] sm:$0xff]  ;;  %v2817_v26 = vld [vmem:[%s3833_s11] sm:$0xff]  }
 0x75d   :  { %2022 = vmatprep.subr.bf16.mxu1 %v2773_v57  ;;  %v2818_v30 = vld [vmem:[%s3833_s11 + $0x48] sm:$0xff]  }
 0x75e   :  { %v1662_v3 = vrot.slane %v1655_v2, %v3080_v27  ;;  %v1645_v27 = vmul.f32 %v3592_v39, %v1641_v53  ;;  %v1764_v2 = vld [vmem:[%s3831_s8 + $0x18] sm:$0xff]  ;;  %v2819_v57 = vld [vmem:[%s3833_s11 + $0x8] sm:$0xff]  }
 0x760   :  { %1663 = vrot.lane.b32.xlu0 %v1662_v3, %s2846_s23  ;;  %2023 = vmatpush1.bf16.msra.mxu1 %v2771_v20  ;;  %v2820_v20 = vld [vmem:[%s3833_s11 + $0x50] sm:$0xff]  }
 0x761   :  { %2024 = vmatprep.subr.bf16.mxu1 %v2776_v16  ;;  %v2821_v16 = vld [vmem:[%s3833_s11 + $0x10] sm:$0xff]  }
 0x764   :  { %2025 = vmatpush1.bf16.msra.mxu1 %v2774_v11  ;;  %v2822_v11 = vld [vmem:[%s3833_s11 + $0x58] sm:$0xff]  }
 0x765   :  { %2026 = vmatprep.subr.bf16.mxu1 %v2779_v12  ;;  %v2823_v12 = vld [vmem:[%s3833_s11 + $0x18] sm:$0xff]  }
 0x768   :  { %2027 = vmatpush1.bf16.msra.mxu1 %v2777_v14  ;;  %v2824_v14 = vld [vmem:[%s3833_s11 + $0x60] sm:$0xff]  }
 0x769   :  { %2028 = vmatprep.subr.bf16.mxu1 %v2782_v15  ;;  %v2825_v15 = vld [vmem:[%s3833_s11 + $0x20] sm:$0xff]  }
 0x76c   :  { %2029 = vmatpush1.bf16.msra.mxu1 %v2780_v44  ;;  %v2826_v44 = vld [vmem:[%s3833_s11 + $0x68] sm:$0xff]  }
 0x76d   :  { %2030 = vmatprep.subr.bf16.mxu1 %v2785_v58  ;;  %v2827_v58 = vld [vmem:[%s3833_s11 + $0x28] sm:$0xff]  }
 0x770   :  { %2031 = vmatpush1.bf16.msra.mxu1 %v2783_v18 }
 0x771   :  { %2032 = vmatprep.subr.bf16.mxu1 %v2788_v21 }
 0x774   :  { %2033 = vmatpush1.bf16.msra.mxu1 %v2786_v25 }
 0x775   :  { %2034 = vmatprep.subr.bf16.mxu1 %v2791_v54 }
 0x778   :  { %2035 = vmatpush1.bf16.msra.mxu1 %v2789_v55 }
 0x779   :  { %2036 = vmatprep.subr.bf16.mxu1 %v2794_v43 }
 0x77c   :  { %2037 = vmatpush1.bf16.msra.mxu1 %v2792_v45  ;;  %v2828_v45 = vld [vmem:[%s3833_s11 + $0x70] sm:$0xff]  }
 0x77d   :  { %2038 = vmatprep.subr.bf16.mxu1 %v2797_v32  ;;  %v2829_v32 = vld [vmem:[%s3833_s11 + $0x30] sm:$0xff]  }
 0x780   :  { %2039 = vmatpush1.bf16.msra.mxu1 %v2795_v46  ;;  %v2830_v46 = vld [vmem:[%s3833_s11 + $0x78] sm:$0xff]  }
 0x781   :  { %2040 = vmatprep.subr.bf16.mxu1 %v2800_v19  ;;  %v2831_v19 = vld [vmem:[%s3833_s11 + $0x38] sm:$0xff]  }
 0x784   :  { %2041 = vmatpush1.bf16.msra.mxu1 %v2798_v8  ;;  %v2103_v8 = vrot.slane %v3625_v35, %v3078_v23 }
 0x785   :  { %2042 = vmatprep.subr.bf16.mxu1 %v2803_v9 }
 0x786   :  { %2200 = vrot.lane.b32.xlu0 %v2103_v8, %s2849_s15 }
 0x788   :  { %2043 = vmatpush1.bf16.msra.mxu1 %v2801_v41 }
 0x789   :  { %2044 = vmatprep.subr.bf16.mxu1 %v2806_v38 }
 0x78c   :  { %2045 = vmatpush1.bf16.msra.mxu1 %v2804_v42 }
 0x78d   :  { %2046 = vmatprep.subr.bf16.mxu1 %v2809_v1 }
 0x790   :  { %2047 = vmatpush1.bf16.msra.mxu1 %v2807_v4 }
 0x791   :  { %2048 = vmatprep.subr.bf16.mxu1 %v2812_v24 }
 0x794   :  { %2049 = vmatpush1.bf16.msra.mxu1 %v2810_v48 }
 0x7d2   :  { %v1664_v6 = vpop.permute.xlu0 %1663 }
 0x7d3   :  { %v1666_v10 = vsub.f32 %v3625_v35, %v1664_v6 }
 0x7d5   :  { %v1671_v60 = vrot.slane %v1666_v10, %v3078_v23 }
 0x7d7   :  { %1672 = vrot.lane.b32.xlu1 %v1671_v60, %s2848_s2 }
 0x849   :  { %v1673_v13 = vpop.permute.xlu1 %1672 }
 0x84a   :  { %v1675_v34 = vadd.f32 %v1673_v13, %v1643_v36  ;;  %v1676_v28 = vadd.f32 %v1673_v13, %v1644_v47  ;;  %v1677_v59 = vadd.f32 %v1673_v13, %v1645_v27  ;;  %v1678_v62 = vadd.f32 %v1673_v13, %v1646_v31  ;;  %v1765_v36 = vld [vmem:[%s3831_s8 + $0x20] sm:$0xff]  ;;  %v1767_v47 = vld [vmem:[%s3831_s8 + $0x30] sm:$0xff] }
 0x84c   :  { %v1679_v37 = vmul.f32 0.3, %v1675_v34  ;;  %v1680_v51 = vmul.f32 0.3, %v1676_v28  ;;  %v1681_v52 = vmul.f32 0.3, %v1677_v59 }
 0x84d   :  { %v1682_v0 = vmul.f32 0.3, %v1678_v62 }
 0x84e   :  { %v1683_v61 = vmax.f32 %v1675_v34, %v1679_v37  ;;  %v1684_v29 = vmax.f32 %v1676_v28, %v1680_v51  ;;  %v1685_v49 = vmax.f32 %v1677_v59, %v1681_v52  ;;  %v1766_v34 = vld [vmem:[%s3831_s8 + $0x28] sm:$0xff]  ;;  %v1768_v28 = vld [vmem:[%s3831_s8 + $0x38] sm:$0xff] }
 0x84f   :  { %v1686_v56 = vmax.f32 %v1678_v62, %v1682_v0 }
 0x850   :  { %v1687_v39 = vpack.c.bf16 %v1684_v29, %v1683_v61 }
 0x851   :  { %v1688_v17 = vpack.c.bf16 %v1686_v56, %v1685_v49  ;;  %v1760_v49 = vld [vmem:[%s3832_s9] sm:$0x1]  ;;  %v2813_v56 = vld [vmem:[%s3830_s10 + $0xf0] ss:$8 sps:$4 sm:$0xff]  }
 0x852   :  { %2333 = vmatmul.mubr.msk.bf16.vlgmr.msra.gmra.mrb[36].mxu0 %vm1577_vm2, %v1687_v39  ;;  %v2815_v39 = vld [vmem:[%s3830_s10 + $0xf4] ss:$8 sps:$4 sm:$0xff]  }
 0x853   :  { %1749 = vmatprep.mubr.bf16.mxu0 %v2847_v22  ;;  %2050 = vmatprep.subr.bf16.mxu1 %v2815_v39 }
 0x854   :  { %2051 = vmatpush1.bf16.msra.mxu1 %v2813_v56 }
 0x85a   :  { %2334 = vmatmul.mubr.msk.bf16.gmra.mrb[40].mxu0 %vm1577_vm2, %v1688_v17  ;;  %v2816_v17 = vld [vmem:[%s3833_s11 + $0x40] sm:$0xff]  }
 0x85b   :  { %1817 = vmatprep.mubr.bf16.mxu0 %v2847_v22 }
 0x925   :  { %v1741_v33 = vpop.f32.mrb[36].mxu0 }
 0x926   :  { %v1743_v53 = vpop.f32.mrb[37].mxu0  ;;  %v1769_v5 = vmul.f32 %v1761_v40, %v1741_v33 }
 0x927   :  { %v1745_v3 = vpop.f32.mrb[38].mxu0  ;;  %v1770_v7 = vmul.f32 %v1762_v63, %v1743_v53  ;;  %v2201_v63 = vpop.permute.xlu0 %2200 }
 0x928   :  { %v1771_v22 = vmul.f32 %v1763_v50, %v1745_v3  ;;  %v1747_v6 = vpop.f32.mrb[39].mxu0 }
 0x929   :  { %v1772_v10 = vmul.f32 %v1764_v2, %v1747_v6 }
 0x92a   :  { %v1777_v60 = vpack.c.bf16 %v1771_v22, %v1769_v5 }
 0x92b   :  { %v1778_v27 = vpack.c.bf16 %v1772_v10, %v1770_v7 }
 0x92d   :  { %v1751_v31 = vpop.f32.mrb[40].mxu0  ;;  %1785 = vmatprep.subr.bf16.mxu0 %v1778_v27 }
 0x92e   :  { %v1753_v13 = vpop.f32.mrb[41].mxu0  ;;  %1786 = vmatpush1.bf16.msra.mxu0 %v1777_v60  ;;  %v1773_v62 = vmul.f32 %v1765_v36, %v1751_v31 }
 0x92f   :  { %v1755_v59 = vpop.f32.mrb[42].mxu0  ;;  %v1774_v52 = vmul.f32 %v1766_v34, %v1753_v13 }
 0x930   :  { %v1775_v37 = vmul.f32 %v1767_v47, %v1755_v59  ;;  %v1757_v51 = vpop.f32.mrb[43].mxu0 }
 0x931   :  { %v1776_v0 = vmul.f32 %v1768_v28, %v1757_v51 }
 0x932   :  { %v1779_v61 = vpack.c.bf16 %v1775_v37, %v1773_v62 }
 0x933   :  { %v1780_v29 = vpack.c.bf16 %v1776_v0, %v1774_v52 }
 0x935   :  { %1787 = vmatprep.subr.bf16.mxu0 %v1780_v29 }
 0x936   :  { %1788 = vmatpush1.bf16.msra.mxu0 %v1779_v61 }
 0x937   :  { %2515 = vmatprep.subr.bf16.mxu0 %v2816_v17 }
 0x939   :  { %2335 = vmatmul.mubr.msk.bf16.vlgmr.msra.gmra.mrb[44].mxu0 %vm1781_vm3, %v1760_v49 }
 0x93a   :  { %2516 = vmatpush3.bf16.msra.mxu0 %v2817_v26 }
 0x93b   :  { %2517 = vmatprep.subr.bf16.mxu0 %v2818_v30 }
 0x93e   :  { %2518 = vmatpush3.bf16.msra.mxu0 %v2819_v57 }
 0x93f   :  { %2519 = vmatprep.subr.bf16.mxu0 %v2820_v20 }
 0x942   :  { %2520 = vmatpush3.bf16.msra.mxu0 %v2821_v16 }
 0x943   :  { %2521 = vmatprep.subr.bf16.mxu0 %v2822_v11 }
 0x946   :  { %2522 = vmatpush3.bf16.msra.mxu0 %v2823_v12 }
 0x947   :  { %2523 = vmatprep.subr.bf16.mxu0 %v2824_v14 }
 0x94a   :  { %2524 = vmatpush3.bf16.msra.mxu0 %v2825_v15 }
 0x94b   :  { %2525 = vmatprep.subr.bf16.mxu0 %v2826_v44 }
 0x94e   :  { %2526 = vmatpush3.bf16.msra.mxu0 %v2827_v58 }
 0x94f   :  { %2527 = vmatprep.subr.bf16.mxu0 %v2828_v45 }
 0x952   :  { %2528 = vmatpush3.bf16.msra.mxu0 %v2829_v32 }
 0x953   :  { %2529 = vmatprep.subr.bf16.mxu0 %v2830_v46 }
 0x956   :  { %2530 = vmatpush3.bf16.msra.mxu0 %v2831_v19 }
 0xa0c   :  { %v1819_v18 = vpop.f32.mrb[44].mxu0 }
 0xa0d   :  { %v1821_v21 = vpop.f32.mrb[45].mxu0  ;;  %v1826_v55 = vpack.c.bf16 %v1819_v18, %v1819_v18 }
 0xa0e   :  { %v1827_v25 = vpack.c.bf16 %v1821_v21, %v1821_v21  ;;  %v1823_v54 = vpop.f32.mrb[46].mxu0 }
 0xa0f   :  { %v1824_v43 = vpop.f32.mrb[47].mxu0 }
 0xa10   :  { %2052 = vmatprep.mubr.bf16.mxu1 %v1827_v25 }
 0xa11   :  { %2053 = vmatmul.mubr.bf16.vlgmr.msra.gmra.mrb[80].mxu1 %v1826_v55 }
 0xae4   :  { %v2054_v9 = vpop.f32.mrb[80].mxu1 }
 0xae5   :  { %v2061_v41 = vmul.f32 0.3, %v2054_v9  ;;  %v2056_v38 = vpop.f32.mrb[81].mxu1 }
 0xae6   :  { %v2062_v42 = vmul.f32 0.3, %v2056_v38  ;;  %v2058_v1 = vpop.f32.mrb[82].mxu1 }
 0xae7   :  { %v2063_v4 = vmax.f32 %v2054_v9, %v2061_v41  ;;  %v2059_v24 = vpop.f32.mrb[83].mxu1 }
 0xae8   :  { %v2064_v48 = vmax.f32 %v2056_v38, %v2062_v42 }
 0xae9   :  { %v2065_v40 = vpack.c.bf16 %v2063_v4, %v2063_v4 }
 0xaea   :  { %v2066_v33 = vpack.c.bf16 %v2064_v48, %v2064_v48 }
 0xaec   :  { %2235 = vmatprep.mubr.bf16.mxu0 %v2066_v33 }
 0xaed   :  { %2236 = vmatmul.mubr.bf16.vlgmr.msra.gmra.mrb[48].mxu0 %v2065_v40 }
 0xbc0   :  { %v2531_v50 = vpop.f32.mrb[48].mxu0 }
 0xbc1   :  { %v2532_v53 = vpop.f32.mrb[49].mxu0 }
 0xbc2   :  { %v2533_v23 = vadd.f32 %v2532_v53, %v2531_v50  ;;  %v2534_v35 = vpop.f32.mrb[50].mxu0 }
 0xbc3   :  { %v2535_v2 = vpop.f32.mrb[51].mxu0 }
 0xbc4   :  { %v2238_v3 = vadd.f32 %v2533_v23, %v2201_v63 }
 0xbc6   :  { %v2243_v5 = vand.u32 2147483647, %v2238_v3  ;;  %vm2247_vm5 = vcmp.ge.f32.partialorder %v2238_v3, 0.0 }
 0xbc8   :  { %v2244_v22 = vsub.f32 0.0, %v2243_v5 }
 0xbca   :  { %v2245_v6 = vmul.f32 1.442695, %v2244_v22 }
 0xbcc   :  { %2836 = vpow2.f32 %v2245_v6 }
 0xbd6   :  { %v2837_v7 = vpop.eup %2836 }
 0xbd7   :  { %v2248_v10 = vadd.f32 1.0, %v2837_v7 }
 0xbd9   :  { %2838 = vrcp.f32 %v2248_v10 }
 0xbe3   :  { %v2839_v60 = vpop.eup %2838 }
 0xbe4   :  { %v2251_v27 = vmul.f32 %v2839_v60, %v2837_v7 }
 0xbe6   :  { %v2252_v31 = vsel %vm2247_vm5, %v2839_v60, %v2251_v27 }
 0xbe7   :  { %2254 = vst.msk [vmem:[%s3834_s13] sm:$0x3] %vm2253_vm4, %v2252_v31 }

</bundles_post_ra>
